<compile_context>
chip_gen: v7x
topology: tpu7x:2x2x1
jax: 0.10.0
libtpu: 0.0.40
codegen_flags: <defaults>
</compile_context>

<pallas_src>
import jax
import jax.numpy as jnp
from jax.experimental import pallas as pl
from jax.experimental.pallas import tpu as pltpu

# ----------------------------- small ViT config -----------------------------
B = 2              # batch
C_IN = 3           # image channels (NCHW input, like PyTorch)
IMG = 16           # spatial size
PATCH = 8          # patch size (stride == kernel)
GRID = IMG // PATCH
NUM_PATCHES = GRID * GRID                 # 4
EMBED = 32         # hidden dim
DEPTH = 2          # transformer blocks
HEADS = 4
HEAD_DIM = EMBED // HEADS
MLP = 4 * EMBED                           # 128
NUM_PREFIX_TOKENS = 1                     # cls token
N_TOK = NUM_PATCHES + NUM_PREFIX_TOKENS   # 5
BT = B * N_TOK                            # 10 stacked tokens
CPP = C_IN * PATCH * PATCH                # flattened patch pixels
LN_EPS = 1e-6

assert 3 * EMBED <= 128 and MLP <= 128, "vec-slab packing assumes <=128 lanes"


# ------------------------------ fused kernel ---------------------------------
def _vit_fused_kernel(pix_ref, patch_w_ref, pos_ref, mask_ref, pool_ref,
                      wqkv_ref, wo_ref, w1_ref, w2_ref, vecs_ref, fcn_ref,
                      o_ref):
    """Single invocation: whole batch, whole network, everything on-chip."""
    f32 = jnp.float32

    def layernorm(v, g, b):
        mu = jnp.mean(v, axis=-1, keepdims=True)
        var = jnp.mean((v - mu) * (v - mu), axis=-1, keepdims=True)
        return (v - mu) * jax.lax.rsqrt(var + jnp.float32(LN_EPS)) * g + b

    def gelu(v):
        # TODO(synk): timm's nn.GELU is the exact erf form; tanh approximation
        # is used for guaranteed Mosaic lowering of the transcendental.
        c = jnp.float32(0.7978845608028654)  # sqrt(2/pi)
        return 0.5 * v * (1.0 + jnp.tanh(c * (v + 0.044715 * v * v * v)))

    # ---- patch embed; cls token / patch bias / pos embed folded into pos ----
    h = jnp.dot(pix_ref[...], patch_w_ref[...],
                preferred_element_type=f32) + pos_ref[...]        # (BT, EMBED)
    mask_bias = mask_ref[...]                                     # (BT, BT)

    # ---- transformer blocks (statically unrolled; DEPTH=2) ------------------
    for d in range(DEPTH):
        V = vecs_ref[d]                                           # (8, 128) slab
        ln1_g, ln1_b = V[0:1, 0:EMBED], V[1:2, 0:EMBED]
        ln2_g, ln2_b = V[2:3, 0:EMBED], V[3:4, 0:EMBED]
        bo, fc2_b = V[4:5, 0:EMBED], V[5:6, 0:EMBED]
        bqkv = V[6:7, 0:3 * EMBED]
        fc1_b = V[7:8, 0:MLP]

        # attention: h = h + proj(attn(norm1(h)))
        n1 = layernorm(h, ln1_g, ln1_b)
        # fused QKV for all heads: one wide matmul (q part is pre-scaled,
        # v bias already folded into the projection bias offline)
        qkv = jnp.dot(n1, wqkv_ref[d], preferred_element_type=f32) + bqkv  # (BT, 96)

        ctx_heads = []
        for hh in range(HEADS):
            lo = hh * HEAD_DIM
            q = qkv[:, lo:lo + HEAD_DIM]
            k = qkv[:, EMBED + lo:EMBED + lo + HEAD_DIM]
            v = qkv[:, 2 * EMBED + lo:2 * EMBED + lo + HEAD_DIM]
            # q @ k^T without an explicit transpose; block-diagonal mask keeps
            # attention within each image of the stacked batch.
            s = jax.lax.dot_general(q, k, (((1,), (1,)), ((), ())),
                                    preferred_element_type=f32) + mask_bias
            s = s - jnp.max(s, axis=-1, keepdims=True)
            p = jnp.exp(s)
            p = p / jnp.sum(p, axis=-1, keepdims=True)            # exact softmax
            ctx_heads.append(jnp.dot(p, v, preferred_element_type=f32))
        ctx = jnp.concatenate(ctx_heads, axis=-1)                 # (BT, EMBED)
        h = h + jnp.dot(ctx, wo_ref[d], preferred_element_type=f32) + bo

        # mlp: h = h + fc2(gelu(fc1(norm2(h))))
        n2 = layernorm(h, ln2_g, ln2_b)
        hid = gelu(jnp.dot(n2, w1_ref[d], preferred_element_type=f32) + fc1_b)
        h = h + jnp.dot(hid, w2_ref[d], preferred_element_type=f32) + fc2_b

    # ---- global_pool == 'avg': per-image mean over patch tokens (no cls) ----
    pooled = jnp.dot(pool_ref[...], h, preferred_element_type=f32)   # (B, EMBED)

    # ---- fc_norm (LayerNorm) + single lane-contiguous store -----------------
    fcn = fcn_ref[...]
    out = layernorm(pooled, fcn[0:1, :], fcn[1:2, :])
    o_ref[...] = out.astype(o_ref.dtype)


# ------------------------------- parameters ----------------------------------
def init_params(key):
    keys = iter(jax.random.split(key, 32))

    def rnd(shape, scale=0.02):
        return (scale * jax.random.normal(next(keys), shape)).astype(jnp.float32)

    params = {
        # conv patch-embed weight (EMBED, C, P, P) flattened to (C*P*P, EMBED)
        "patch_w": rnd((CPP, EMBED)),
        "patch_b": jnp.zeros((EMBED,), jnp.float32),
        "cls_token": rnd((1, 1, EMBED)),
        "pos_embed": rnd((1, N_TOK, EMBED)),
        "fc_norm_g": jnp.ones((EMBED,), jnp.float32),
        "fc_norm_b": jnp.zeros((EMBED,), jnp.float32),
        "blocks": [],
    }
    for _ in range(DEPTH):
        params["blocks"].append({
            "ln1_g": jnp.ones((EMBED,), jnp.float32),
            "ln1_b": jnp.zeros((EMBED,), jnp.float32),
            "qkv_w": rnd((EMBED, 3 * EMBED)),   # columns ordered [q | k | v]
            "qkv_b": jnp.zeros((3 * EMBED,), jnp.float32),
            "proj_w": rnd((EMBED, EMBED)),
            "proj_b": jnp.zeros((EMBED,), jnp.float32),
            "ln2_g": jnp.ones((EMBED,), jnp.float32),
            "ln2_b": jnp.zeros((EMBED,), jnp.float32),
            "fc1_w": rnd((EMBED, MLP)),
            "fc1_b": jnp.zeros((MLP,), jnp.float32),
            "fc2_w": rnd((MLP, EMBED)),
            "fc2_b": jnp.zeros((EMBED,), jnp.float32),
        })
    return params


def _pack_params(params):
    """Lane-dense weight slabs + one coalesced (DEPTH, 8, 128) bias/LN slab.
    Also folds the q-scale into wq/bq and the v bias into the proj bias."""
    scale = jnp.float32(HEAD_DIM ** -0.5)
    wqkv_l, wo_l, w1_l, w2_l, vec_l = [], [], [], [], []
    for blk in params["blocks"]:
        qkv_w, qkv_b = blk["qkv_w"], blk["qkv_b"]
        wq = qkv_w[:, 0:EMBED] * scale            # fold 1/sqrt(head_dim)
        wk = qkv_w[:, EMBED:2 * EMBED]
        wv = qkv_w[:, 2 * EMBED:3 * EMBED]
        bq = qkv_b[0:EMBED] * scale
        bk = qkv_b[EMBED:2 * EMBED]
        bv = qkv_b[2 * EMBED:3 * EMBED]
        # softmax rows sum to 1  =>  p @ (v + bv) = p @ v + bv,
        # hence (... + bv) @ proj_w folds into the projection bias offline.
        bo = blk["proj_b"] + bv @ blk["proj_w"]
        bqkv = jnp.concatenate([bq, bk, jnp.zeros_like(bv)], axis=0)   # (96,)

        vec = jnp.zeros((8, 128), jnp.float32)
        vec = vec.at[0, 0:EMBED].set(blk["ln1_g"])
        vec = vec.at[1, 0:EMBED].set(blk["ln1_b"])
        vec = vec.at[2, 0:EMBED].set(blk["ln2_g"])
        vec = vec.at[3, 0:EMBED].set(blk["ln2_b"])
        vec = vec.at[4, 0:EMBED].set(bo)
        vec = vec.at[5, 0:EMBED].set(blk["fc2_b"])
        vec = vec.at[6, 0:3 * EMBED].set(bqkv)
        vec = vec.at[7, 0:MLP].set(blk["fc1_b"])

        wqkv_l.append(jnp.concatenate([wq, wk, wv], axis=1))   # (EMBED, 3*EMBED)
        wo_l.append(blk["proj_w"])                             # (EMBED, EMBED)
        w1_l.append(blk["fc1_w"])                              # (EMBED, MLP)
        w2_l.append(blk["fc2_w"])                              # (MLP, EMBED)
        vec_l.append(vec)
    return dict(wqkv=jnp.stack(wqkv_l), wo=jnp.stack(wo_l),
                w1=jnp.stack(w1_l), w2=jnp.stack(w2_l), vecs=jnp.stack(vec_l))


# ------------------------------- forward pass --------------------------------
def vit_extractor_forward(params, x):
    """x: NCHW float32 (B, C, H, W)  ->  (B, EMBED)."""
    Bn = x.shape[0]
    bt = Bn * N_TOK

    # patchify: conv(kernel=stride=PATCH) == patch extraction + matmul
    patches = x.reshape(Bn, C_IN, GRID, PATCH, GRID, PATCH)
    patches = patches.transpose(0, 2, 4, 1, 3, 5).reshape(Bn, NUM_PATCHES, CPP)
    # zero pixel row for the cls token (its embedding comes from pos_adj)
    pix = jnp.concatenate(
        [jnp.zeros((Bn, 1, CPP), patches.dtype), patches], axis=1).reshape(bt, CPP)

    # fold cls token / patch-embed bias into a single per-token additive term
    pos = params["pos_embed"][0]
    pos_adj = jnp.concatenate(
        [params["cls_token"].reshape(1, EMBED) + pos[0:1, :],
         pos[1:, :] + params["patch_b"][None, :]], axis=0)
    pos_adj = jnp.tile(pos_adj, (Bn, 1))                          # (BT, EMBED)

    # block-diagonal attention bias + patch-token pooling matrix
    img_idx = jnp.arange(bt) // N_TOK
    mask_bias = jnp.where(img_idx[:, None] == img_idx[None, :],
                          0.0, -1e30).astype(jnp.float32)         # (BT, BT)
    is_patch = (jnp.arange(bt) % N_TOK) >= NUM_PREFIX_TOKENS
    pool_mat = ((img_idx[None, :] == jnp.arange(Bn)[:, None]) & is_patch[None, :]
                ).astype(jnp.float32) / NUM_PATCHES               # (B, BT)

    pk = _pack_params(params)
    fcn = jnp.stack([params["fc_norm_g"], params["fc_norm_b"]], axis=0)  # (2, EMBED)

    vmem = pl.BlockSpec(memory_space=pltpu.MemorySpace.VMEM)
    out = pl.pallas_call(
        _vit_fused_kernel,
        out_shape=jax.ShapeDtypeStruct((Bn, EMBED), x.dtype),
        in_specs=[vmem] * 11,
        out_specs=vmem,
    )(pix, params["patch_w"], pos_adj, mask_bias, pool_mat,
      pk["wqkv"], pk["wo"], pk["w1"], pk["w2"], pk["vecs"], fcn)
    return out


# ------------------------- pure-JAX reference (checking) ---------------------
def _ln_ref(v, g, b):
    mu = v.mean(axis=-1, keepdims=True)
    var = ((v - mu) ** 2).mean(axis=-1, keepdims=True)
    return (v - mu) * jax.lax.rsqrt(var + LN_EPS) * g + b


def _gelu_ref(v):
    c = 0.7978845608028654
    return 0.5 * v * (1.0 + jnp.tanh(c * (v + 0.044715 * v * v * v)))


def vit_reference(params, x):
    Bn = x.shape[0]
    patches = x.reshape(Bn, C_IN, GRID, PATCH, GRID, PATCH)
    patches = patches.transpose(0, 2, 4, 1, 3, 5).reshape(Bn, NUM_PATCHES, CPP)
    tok = patches @ params["patch_w"] + params["patch_b"]
    cls = jnp.broadcast_to(params["cls_token"], (Bn, 1, EMBED))
    h = jnp.concatenate([cls, tok], axis=1) + params["pos_embed"]
    scale = HEAD_DIM ** -0.5
    for blk in params["blocks"]:
        n1 = _ln_ref(h, blk["ln1_g"], blk["ln1_b"])
        qkv = (n1 @ blk["qkv_w"] + blk["qkv_b"]).reshape(Bn, N_TOK, 3, HEADS, HEAD_DIM)
        q = qkv[:, :, 0].transpose(0, 2, 1, 3) * scale
        k = qkv[:, :, 1].transpose(0, 2, 1, 3)
        v = qkv[:, :, 2].transpose(0, 2, 1, 3)
        p = jax.nn.softmax(q @ jnp.swapaxes(k, -1, -2), axis=-1)
        ctx = (p @ v).transpose(0, 2, 1, 3).reshape(Bn, N_TOK, EMBED)
        h = h + ctx @ blk["proj_w"] + blk["proj_b"]
        n2 = _ln_ref(h, blk["ln2_g"], blk["ln2_b"])
        h = h + _gelu_ref(n2 @ blk["fc1_w"] + blk["fc1_b"]) @ blk["fc2_w"] + blk["fc2_b"]
    pooled = h[:, NUM_PREFIX_TOKENS:].mean(axis=1)
    return _ln_ref(pooled, params["fc_norm_g"], params["fc_norm_b"])


# ------------------------------------ main -----------------------------------
if __name__ == "__main__":
    key = jax.random.PRNGKey(0)
    pkey, xkey = jax.random.split(key)
    params = init_params(pkey)
    x = jax.random.normal(xkey, (B, C_IN, IMG, IMG), dtype=jnp.float32)

    fwd = jax.jit(vit_extractor_forward)
    out = jax.block_until_ready(fwd(params, x))

    assert out.shape == (B, EMBED), out.shape
    assert out.dtype == jnp.float32
    assert bool(jnp.all(jnp.isfinite(out)))

    ref = vit_reference(params, x)
    err = float(jnp.max(jnp.abs(out - ref)))
    assert err < 5e-2, f"max abs diff vs reference: {err}"
    print("KERNEL_OK")
</pallas_src>

<mosaic_0001>
module attributes {stable_mosaic.version = 11 : i64} {
  func.func @_vit_fused_kernel(%arg0: memref<10x192xf32, #tpu.memory_space<vmem>>, %arg1: memref<192x32xf32, #tpu.memory_space<vmem>>, %arg2: memref<10x32xf32, #tpu.memory_space<vmem>>, %arg3: memref<10x10xf32, #tpu.memory_space<vmem>>, %arg4: memref<2x10xf32, #tpu.memory_space<vmem>>, %arg5: memref<2x32x96xf32, #tpu.memory_space<vmem>>, %arg6: memref<2x32x32xf32, #tpu.memory_space<vmem>>, %arg7: memref<2x32x128xf32, #tpu.memory_space<vmem>>, %arg8: memref<2x128x32xf32, #tpu.memory_space<vmem>>, %arg9: memref<2x8x128xf32, #tpu.memory_space<vmem>>, %arg10: memref<2x32xf32, #tpu.memory_space<vmem>>, %arg11: memref<2x32xf32, #tpu.memory_space<vmem>>) attributes {dimension_semantics = [], scalar_prefetch = 0 : i64, scratch_operands = 0 : i64, tpu.core_type = #tpu.core_type<tc>} {
    %c0 = arith.constant 0 : index
    %c0_0 = arith.constant 0 : index
    %0 = vector.load %arg0[%c0, %c0_0] : memref<10x192xf32, #tpu.memory_space<vmem>>, vector<10x192xf32>
    %c0_1 = arith.constant 0 : index
    %c0_2 = arith.constant 0 : index
    %1 = vector.load %arg1[%c0_1, %c0_2] : memref<192x32xf32, #tpu.memory_space<vmem>>, vector<192x32xf32>
    %cst = arith.constant dense<0.000000e+00> : vector<10x32xf32>
    %2 = tpu.matmul %0, %1, %cst {dimension_numbers = #tpu.dot_dimension_numbers<[1], [0], [0], [1], [0, 0, 1, 1], [], []>} : vector<10x192xf32>, vector<192x32xf32>, vector<10x32xf32> -> vector<10x32xf32>
    %c0_3 = arith.constant 0 : index
    %c0_4 = arith.constant 0 : index
    %3 = vector.load %arg2[%c0_3, %c0_4] : memref<10x32xf32, #tpu.memory_space<vmem>>, vector<10x32xf32>
    %4 = arith.addf %2, %3 : vector<10x32xf32>
    %c0_5 = arith.constant 0 : index
    %c0_6 = arith.constant 0 : index
    %5 = vector.load %arg3[%c0_5, %c0_6] : memref<10x10xf32, #tpu.memory_space<vmem>>, vector<10x10xf32>
    %c0_7 = arith.constant 0 : index
    %c0_8 = arith.constant 0 : index
    %c0_9 = arith.constant 0 : index
    %6 = vector.load %arg9[%c0_7, %c0_8, %c0_9] : memref<2x8x128xf32, #tpu.memory_space<vmem>>, vector<1x8x128xf32>
    %7 = vector.shape_cast %6 : vector<1x8x128xf32> to vector<8x128xf32>
    %8 = vector.extract_strided_slice %7 {offsets = [0, 0], sizes = [1, 32], strides = [1, 1]} : vector<8x128xf32> to vector<1x32xf32>
    %9 = vector.extract_strided_slice %7 {offsets = [1, 0], sizes = [1, 32], strides = [1, 1]} : vector<8x128xf32> to vector<1x32xf32>
    %10 = vector.extract_strided_slice %7 {offsets = [2, 0], sizes = [1, 32], strides = [1, 1]} : vector<8x128xf32> to vector<1x32xf32>
    %11 = vector.extract_strided_slice %7 {offsets = [3, 0], sizes = [1, 32], strides = [1, 1]} : vector<8x128xf32> to vector<1x32xf32>
    %12 = vector.extract_strided_slice %7 {offsets = [4, 0], sizes = [1, 32], strides = [1, 1]} : vector<8x128xf32> to vector<1x32xf32>
    %13 = vector.extract_strided_slice %7 {offsets = [5, 0], sizes = [1, 32], strides = [1, 1]} : vector<8x128xf32> to vector<1x32xf32>
    %14 = vector.extract_strided_slice %7 {offsets = [6, 0], sizes = [1, 96], strides = [1, 1]} : vector<8x128xf32> to vector<1x96xf32>
    %15 = vector.extract_strided_slice %7 {offsets = [7, 0], sizes = [1, 128], strides = [1, 1]} : vector<8x128xf32> to vector<1x128xf32>
    %cst_10 = arith.constant dense<0.000000e+00> : vector<10xf32>
    %16 = vector.multi_reduction <add>, %4, %cst_10 [1] : vector<10x32xf32> to vector<10xf32>
    %17 = vector.shape_cast %16 : vector<10xf32> to vector<10x1xf32>
    %cst_11 = arith.constant 3.200000e+01 : f32
    %18 = vector.broadcast %cst_11 : f32 to vector<10x1xf32>
    %19 = arith.divf %17, %18 : vector<10x1xf32>
    %20 = vector.broadcast %19 : vector<10x1xf32> to vector<10x32xf32>
    %21 = arith.subf %4, %20 : vector<10x32xf32>
    %22 = vector.broadcast %19 : vector<10x1xf32> to vector<10x32xf32>
    %23 = arith.subf %4, %22 : vector<10x32xf32>
    %24 = arith.mulf %21, %23 : vector<10x32xf32>
    %cst_12 = arith.constant dense<0.000000e+00> : vector<10xf32>
    %25 = vector.multi_reduction <add>, %24, %cst_12 [1] : vector<10x32xf32> to vector<10xf32>
    %26 = vector.shape_cast %25 : vector<10xf32> to vector<10x1xf32>
    %cst_13 = arith.constant 3.200000e+01 : f32
    %27 = vector.broadcast %cst_13 : f32 to vector<10x1xf32>
    %28 = arith.divf %26, %27 : vector<10x1xf32>
    %29 = vector.broadcast %19 : vector<10x1xf32> to vector<10x32xf32>
    %30 = arith.subf %4, %29 : vector<10x32xf32>
    %cst_14 = arith.constant 9.99999997E-7 : f32
    %31 = vector.broadcast %cst_14 : f32 to vector<10x1xf32>
    %32 = arith.addf %28, %31 : vector<10x1xf32>
    %33 = math.rsqrt %32 : vector<10x1xf32>
    %34 = vector.broadcast %33 : vector<10x1xf32> to vector<10x32xf32>
    %35 = arith.mulf %30, %34 : vector<10x32xf32>
    %36 = vector.broadcast %8 : vector<1x32xf32> to vector<10x32xf32>
    %37 = arith.mulf %35, %36 : vector<10x32xf32>
    %38 = vector.broadcast %9 : vector<1x32xf32> to vector<10x32xf32>
    %39 = arith.addf %37, %38 : vector<10x32xf32>
    %c0_15 = arith.constant 0 : index
    %c0_16 = arith.constant 0 : index
    %c0_17 = arith.constant 0 : index
    %40 = vector.load %arg5[%c0_15, %c0_16, %c0_17] : memref<2x32x96xf32, #tpu.memory_space<vmem>>, vector<1x32x96xf32>
    %41 = vector.shape_cast %40 : vector<1x32x96xf32> to vector<32x96xf32>
    %cst_18 = arith.constant dense<0.000000e+00> : vector<10x96xf32>
    %42 = tpu.matmul %39, %41, %cst_18 {dimension_numbers = #tpu.dot_dimension_numbers<[1], [0], [0], [1], [0, 0, 1, 1], [], []>} : vector<10x32xf32>, vector<32x96xf32>, vector<10x96xf32> -> vector<10x96xf32>
    %43 = vector.broadcast %14 : vector<1x96xf32> to vector<10x96xf32>
    %44 = arith.addf %42, %43 : vector<10x96xf32>
    %45 = vector.extract_strided_slice %44 {offsets = [0, 0], sizes = [10, 8], strides = [1, 1]} : vector<10x96xf32> to vector<10x8xf32>
    %46 = vector.extract_strided_slice %44 {offsets = [0, 32], sizes = [10, 8], strides = [1, 1]} : vector<10x96xf32> to vector<10x8xf32>
    %47 = vector.extract_strided_slice %44 {offsets = [0, 64], sizes = [10, 8], strides = [1, 1]} : vector<10x96xf32> to vector<10x8xf32>
    %cst_19 = arith.constant dense<0.000000e+00> : vector<10x10xf32>
    %48 = tpu.matmul %45, %46, %cst_19 {dimension_numbers = #tpu.dot_dimension_numbers<[1], [1], [0], [0], [0, 0, 1, 0], [], []>} : vector<10x8xf32>, vector<10x8xf32>, vector<10x10xf32> -> vector<10x10xf32>
    %49 = arith.addf %48, %5 : vector<10x10xf32>
    %cst_20 = arith.constant dense<0xFF800000> : vector<10xf32>
    %50 = vector.multi_reduction <maximumf>, %49, %cst_20 [1] : vector<10x10xf32> to vector<10xf32>
    %51 = vector.shape_cast %50 : vector<10xf32> to vector<10x1xf32>
    %52 = vector.broadcast %51 : vector<10x1xf32> to vector<10x10xf32>
    %53 = arith.subf %49, %52 : vector<10x10xf32>
    %54 = math.exp %53 : vector<10x10xf32>
    %cst_21 = arith.constant dense<0.000000e+00> : vector<10xf32>
    %55 = vector.multi_reduction <add>, %54, %cst_21 [1] : vector<10x10xf32> to vector<10xf32>
    %56 = vector.shape_cast %55 : vector<10xf32> to vector<10x1xf32>
    %57 = vector.broadcast %56 : vector<10x1xf32> to vector<10x10xf32>
    %58 = arith.divf %54, %57 : vector<10x10xf32>
    %cst_22 = arith.constant dense<0.000000e+00> : vector<10x8xf32>
    %59 = tpu.matmul %58, %47, %cst_22 {dimension_numbers = #tpu.dot_dimension_numbers<[1], [0], [0], [1], [0, 0, 1, 1], [], []>} : vector<10x10xf32>, vector<10x8xf32>, vector<10x8xf32> -> vector<10x8xf32>
    %60 = vector.extract_strided_slice %44 {offsets = [0, 8], sizes = [10, 8], strides = [1, 1]} : vector<10x96xf32> to vector<10x8xf32>
    %61 = vector.extract_strided_slice %44 {offsets = [0, 40], sizes = [10, 8], strides = [1, 1]} : vector<10x96xf32> to vector<10x8xf32>
    %62 = vector.extract_strided_slice %44 {offsets = [0, 72], sizes = [10, 8], strides = [1, 1]} : vector<10x96xf32> to vector<10x8xf32>
    %cst_23 = arith.constant dense<0.000000e+00> : vector<10x10xf32>
    %63 = tpu.matmul %60, %61, %cst_23 {dimension_numbers = #tpu.dot_dimension_numbers<[1], [1], [0], [0], [0, 0, 1, 0], [], []>} : vector<10x8xf32>, vector<10x8xf32>, vector<10x10xf32> -> vector<10x10xf32>
    %64 = arith.addf %63, %5 : vector<10x10xf32>
    %cst_24 = arith.constant dense<0xFF800000> : vector<10xf32>
    %65 = vector.multi_reduction <maximumf>, %64, %cst_24 [1] : vector<10x10xf32> to vector<10xf32>
    %66 = vector.shape_cast %65 : vector<10xf32> to vector<10x1xf32>
    %67 = vector.broadcast %66 : vector<10x1xf32> to vector<10x10xf32>
    %68 = arith.subf %64, %67 : vector<10x10xf32>
    %69 = math.exp %68 : vector<10x10xf32>
    %cst_25 = arith.constant dense<0.000000e+00> : vector<10xf32>
    %70 = vector.multi_reduction <add>, %69, %cst_25 [1] : vector<10x10xf32> to vector<10xf32>
    %71 = vector.shape_cast %70 : vector<10xf32> to vector<10x1xf32>
    %72 = vector.broadcast %71 : vector<10x1xf32> to vector<10x10xf32>
    %73 = arith.divf %69, %72 : vector<10x10xf32>
    %cst_26 = arith.constant dense<0.000000e+00> : vector<10x8xf32>
    %74 = tpu.matmul %73, %62, %cst_26 {dimension_numbers = #tpu.dot_dimension_numbers<[1], [0], [0], [1], [0, 0, 1, 1], [], []>} : vector<10x10xf32>, vector<10x8xf32>, vector<10x8xf32> -> vector<10x8xf32>
    %75 = vector.extract_strided_slice %44 {offsets = [0, 16], sizes = [10, 8], strides = [1, 1]} : vector<10x96xf32> to vector<10x8xf32>
    %76 = vector.extract_strided_slice %44 {offsets = [0, 48], sizes = [10, 8], strides = [1, 1]} : vector<10x96xf32> to vector<10x8xf32>
    %77 = vector.extract_strided_slice %44 {offsets = [0, 80], sizes = [10, 8], strides = [1, 1]} : vector<10x96xf32> to vector<10x8xf32>
    %cst_27 = arith.constant dense<0.000000e+00> : vector<10x10xf32>
    %78 = tpu.matmul %75, %76, %cst_27 {dimension_numbers = #tpu.dot_dimension_numbers<[1], [1], [0], [0], [0, 0, 1, 0], [], []>} : vector<10x8xf32>, vector<10x8xf32>, vector<10x10xf32> -> vector<10x10xf32>
    %79 = arith.addf %78, %5 : vector<10x10xf32>
    %cst_28 = arith.constant dense<0xFF800000> : vector<10xf32>
    %80 = vector.multi_reduction <maximumf>, %79, %cst_28 [1] : vector<10x10xf32> to vector<10xf32>
    %81 = vector.shape_cast %80 : vector<10xf32> to vector<10x1xf32>
    %82 = vector.broadcast %81 : vector<10x1xf32> to vector<10x10xf32>
    %83 = arith.subf %79, %82 : vector<10x10xf32>
    %84 = math.exp %83 : vector<10x10xf32>
    %cst_29 = arith.constant dense<0.000000e+00> : vector<10xf32>
    %85 = vector.multi_reduction <add>, %84, %cst_29 [1] : vector<10x10xf32> to vector<10xf32>
    %86 = vector.shape_cast %85 : vector<10xf32> to vector<10x1xf32>
    %87 = vector.broadcast %86 : vector<10x1xf32> to vector<10x10xf32>
    %88 = arith.divf %84, %87 : vector<10x10xf32>
    %cst_30 = arith.constant dense<0.000000e+00> : vector<10x8xf32>
    %89 = tpu.matmul %88, %77, %cst_30 {dimension_numbers = #tpu.dot_dimension_numbers<[1], [0], [0], [1], [0, 0, 1, 1], [], []>} : vector<10x10xf32>, vector<10x8xf32>, vector<10x8xf32> -> vector<10x8xf32>
    %90 = vector.extract_strided_slice %44 {offsets = [0, 24], sizes = [10, 8], strides = [1, 1]} : vector<10x96xf32> to vector<10x8xf32>
    %91 = vector.extract_strided_slice %44 {offsets = [0, 56], sizes = [10, 8], strides = [1, 1]} : vector<10x96xf32> to vector<10x8xf32>
    %92 = vector.extract_strided_slice %44 {offsets = [0, 88], sizes = [10, 8], strides = [1, 1]} : vector<10x96xf32> to vector<10x8xf32>
    %cst_31 = arith.constant dense<0.000000e+00> : vector<10x10xf32>
    %93 = tpu.matmul %90, %91, %cst_31 {dimension_numbers = #tpu.dot_dimension_numbers<[1], [1], [0], [0], [0, 0, 1, 0], [], []>} : vector<10x8xf32>, vector<10x8xf32>, vector<10x10xf32> -> vector<10x10xf32>
    %94 = arith.addf %93, %5 : vector<10x10xf32>
    %cst_32 = arith.constant dense<0xFF800000> : vector<10xf32>
    %95 = vector.multi_reduction <maximumf>, %94, %cst_32 [1] : vector<10x10xf32> to vector<10xf32>
    %96 = vector.shape_cast %95 : vector<10xf32> to vector<10x1xf32>
    %97 = vector.broadcast %96 : vector<10x1xf32> to vector<10x10xf32>
    %98 = arith.subf %94, %97 : vector<10x10xf32>
    %99 = math.exp %98 : vector<10x10xf32>
    %cst_33 = arith.constant dense<0.000000e+00> : vector<10xf32>
    %100 = vector.multi_reduction <add>, %99, %cst_33 [1] : vector<10x10xf32> to vector<10xf32>
    %101 = vector.shape_cast %100 : vector<10xf32> to vector<10x1xf32>
    %102 = vector.broadcast %101 : vector<10x1xf32> to vector<10x10xf32>
    %103 = arith.divf %99, %102 : vector<10x10xf32>
    %cst_34 = arith.constant dense<0.000000e+00> : vector<10x8xf32>
    %104 = tpu.matmul %103, %92, %cst_34 {dimension_numbers = #tpu.dot_dimension_numbers<[1], [0], [0], [1], [0, 0, 1, 1], [], []>} : vector<10x10xf32>, vector<10x8xf32>, vector<10x8xf32> -> vector<10x8xf32>
    %105 = tpu.concatenate %59, %74, %89, %104 in 1 : vector<10x8xf32>, vector<10x8xf32>, vector<10x8xf32>, vector<10x8xf32> -> vector<10x32xf32>
    %c0_35 = arith.constant 0 : index
    %c0_36 = arith.constant 0 : index
    %c0_37 = arith.constant 0 : index
    %106 = vector.load %arg6[%c0_35, %c0_36, %c0_37] : memref<2x32x32xf32, #tpu.memory_space<vmem>>, vector<1x32x32xf32>
    %107 = vector.shape_cast %106 : vector<1x32x32xf32> to vector<32x32xf32>
    %cst_38 = arith.constant dense<0.000000e+00> : vector<10x32xf32>
    %108 = tpu.matmul %105, %107, %cst_38 {dimension_numbers = #tpu.dot_dimension_numbers<[1], [0], [0], [1], [0, 0, 1, 1], [], []>} : vector<10x32xf32>, vector<32x32xf32>, vector<10x32xf32> -> vector<10x32xf32>
    %109 = arith.addf %4, %108 : vector<10x32xf32>
    %110 = vector.broadcast %12 : vector<1x32xf32> to vector<10x32xf32>
    %111 = arith.addf %109, %110 : vector<10x32xf32>
    %cst_39 = arith.constant dense<0.000000e+00> : vector<10xf32>
    %112 = vector.multi_reduction <add>, %111, %cst_39 [1] : vector<10x32xf32> to vector<10xf32>
    %113 = vector.shape_cast %112 : vector<10xf32> to vector<10x1xf32>
    %cst_40 = arith.constant 3.200000e+01 : f32
    %114 = vector.broadcast %cst_40 : f32 to vector<10x1xf32>
    %115 = arith.divf %113, %114 : vector<10x1xf32>
    %116 = vector.broadcast %115 : vector<10x1xf32> to vector<10x32xf32>
    %117 = arith.subf %111, %116 : vector<10x32xf32>
    %118 = vector.broadcast %115 : vector<10x1xf32> to vector<10x32xf32>
    %119 = arith.subf %111, %118 : vector<10x32xf32>
    %120 = arith.mulf %117, %119 : vector<10x32xf32>
    %cst_41 = arith.constant dense<0.000000e+00> : vector<10xf32>
    %121 = vector.multi_reduction <add>, %120, %cst_41 [1] : vector<10x32xf32> to vector<10xf32>
    %122 = vector.shape_cast %121 : vector<10xf32> to vector<10x1xf32>
    %cst_42 = arith.constant 3.200000e+01 : f32
    %123 = vector.broadcast %cst_42 : f32 to vector<10x1xf32>
    %124 = arith.divf %122, %123 : vector<10x1xf32>
    %125 = vector.broadcast %115 : vector<10x1xf32> to vector<10x32xf32>
    %126 = arith.subf %111, %125 : vector<10x32xf32>
    %cst_43 = arith.constant 9.99999997E-7 : f32
    %127 = vector.broadcast %cst_43 : f32 to vector<10x1xf32>
    %128 = arith.addf %124, %127 : vector<10x1xf32>
    %129 = math.rsqrt %128 : vector<10x1xf32>
    %130 = vector.broadcast %129 : vector<10x1xf32> to vector<10x32xf32>
    %131 = arith.mulf %126, %130 : vector<10x32xf32>
    %132 = vector.broadcast %10 : vector<1x32xf32> to vector<10x32xf32>
    %133 = arith.mulf %131, %132 : vector<10x32xf32>
    %134 = vector.broadcast %11 : vector<1x32xf32> to vector<10x32xf32>
    %135 = arith.addf %133, %134 : vector<10x32xf32>
    %c0_44 = arith.constant 0 : index
    %c0_45 = arith.constant 0 : index
    %c0_46 = arith.constant 0 : index
    %136 = vector.load %arg7[%c0_44, %c0_45, %c0_46] : memref<2x32x128xf32, #tpu.memory_space<vmem>>, vector<1x32x128xf32>
    %137 = vector.shape_cast %136 : vector<1x32x128xf32> to vector<32x128xf32>
    %cst_47 = arith.constant dense<0.000000e+00> : vector<10x128xf32>
    %138 = tpu.matmul %135, %137, %cst_47 {dimension_numbers = #tpu.dot_dimension_numbers<[1], [0], [0], [1], [0, 0, 1, 1], [], []>} : vector<10x32xf32>, vector<32x128xf32>, vector<10x128xf32> -> vector<10x128xf32>
    %139 = vector.broadcast %15 : vector<1x128xf32> to vector<10x128xf32>
    %140 = arith.addf %138, %139 : vector<10x128xf32>
    %cst_48 = arith.constant 5.000000e-01 : f32
    %141 = vector.broadcast %cst_48 : f32 to vector<10x128xf32>
    %142 = arith.mulf %141, %140 : vector<10x128xf32>
    %cst_49 = arith.constant 4.471500e-02 : f32
    %143 = vector.broadcast %cst_49 : f32 to vector<10x128xf32>
    %144 = arith.mulf %143, %140 : vector<10x128xf32>
    %145 = arith.mulf %144, %140 : vector<10x128xf32>
    %146 = arith.mulf %145, %140 : vector<10x128xf32>
    %147 = arith.addf %140, %146 : vector<10x128xf32>
    %cst_50 = arith.constant 0.797884583 : f32
    %148 = vector.broadcast %cst_50 : f32 to vector<10x128xf32>
    %149 = arith.mulf %148, %147 : vector<10x128xf32>
    %150 = math.tanh %149 : vector<10x128xf32>
    %cst_51 = arith.constant 1.000000e+00 : f32
    %151 = vector.broadcast %cst_51 : f32 to vector<10x128xf32>
    %152 = arith.addf %151, %150 : vector<10x128xf32>
    %153 = arith.mulf %142, %152 : vector<10x128xf32>
    %c0_52 = arith.constant 0 : index
    %c0_53 = arith.constant 0 : index
    %c0_54 = arith.constant 0 : index
    %154 = vector.load %arg8[%c0_52, %c0_53, %c0_54] : memref<2x128x32xf32, #tpu.memory_space<vmem>>, vector<1x128x32xf32>
    %155 = vector.shape_cast %154 : vector<1x128x32xf32> to vector<128x32xf32>
    %cst_55 = arith.constant dense<0.000000e+00> : vector<10x32xf32>
    %156 = tpu.matmul %153, %155, %cst_55 {dimension_numbers = #tpu.dot_dimension_numbers<[1], [0], [0], [1], [0, 0, 1, 1], [], []>} : vector<10x128xf32>, vector<128x32xf32>, vector<10x32xf32> -> vector<10x32xf32>
    %157 = arith.addf %111, %156 : vector<10x32xf32>
    %158 = vector.broadcast %13 : vector<1x32xf32> to vector<10x32xf32>
    %159 = arith.addf %157, %158 : vector<10x32xf32>
    %c1 = arith.constant 1 : index
    %c0_56 = arith.constant 0 : index
    %c0_57 = arith.constant 0 : index
    %160 = vector.load %arg9[%c1, %c0_56, %c0_57] : memref<2x8x128xf32, #tpu.memory_space<vmem>>, vector<1x8x128xf32>
    %161 = vector.shape_cast %160 : vector<1x8x128xf32> to vector<8x128xf32>
    %162 = vector.extract_strided_slice %161 {offsets = [0, 0], sizes = [1, 32], strides = [1, 1]} : vector<8x128xf32> to vector<1x32xf32>
    %163 = vector.extract_strided_slice %161 {offsets = [1, 0], sizes = [1, 32], strides = [1, 1]} : vector<8x128xf32> to vector<1x32xf32>
    %164 = vector.extract_strided_slice %161 {offsets = [2, 0], sizes = [1, 32], strides = [1, 1]} : vector<8x128xf32> to vector<1x32xf32>
    %165 = vector.extract_strided_slice %161 {offsets = [3, 0], sizes = [1, 32], strides = [1, 1]} : vector<8x128xf32> to vector<1x32xf32>
    %166 = vector.extract_strided_slice %161 {offsets = [4, 0], sizes = [1, 32], strides = [1, 1]} : vector<8x128xf32> to vector<1x32xf32>
    %167 = vector.extract_strided_slice %161 {offsets = [5, 0], sizes = [1, 32], strides = [1, 1]} : vector<8x128xf32> to vector<1x32xf32>
    %168 = vector.extract_strided_slice %161 {offsets = [6, 0], sizes = [1, 96], strides = [1, 1]} : vector<8x128xf32> to vector<1x96xf32>
    %169 = vector.extract_strided_slice %161 {offsets = [7, 0], sizes = [1, 128], strides = [1, 1]} : vector<8x128xf32> to vector<1x128xf32>
    %cst_58 = arith.constant dense<0.000000e+00> : vector<10xf32>
    %170 = vector.multi_reduction <add>, %159, %cst_58 [1] : vector<10x32xf32> to vector<10xf32>
    %171 = vector.shape_cast %170 : vector<10xf32> to vector<10x1xf32>
    %cst_59 = arith.constant 3.200000e+01 : f32
    %172 = vector.broadcast %cst_59 : f32 to vector<10x1xf32>
    %173 = arith.divf %171, %172 : vector<10x1xf32>
    %174 = vector.broadcast %173 : vector<10x1xf32> to vector<10x32xf32>
    %175 = arith.subf %159, %174 : vector<10x32xf32>
    %176 = vector.broadcast %173 : vector<10x1xf32> to vector<10x32xf32>
    %177 = arith.subf %159, %176 : vector<10x32xf32>
    %178 = arith.mulf %175, %177 : vector<10x32xf32>
    %cst_60 = arith.constant dense<0.000000e+00> : vector<10xf32>
    %179 = vector.multi_reduction <add>, %178, %cst_60 [1] : vector<10x32xf32> to vector<10xf32>
    %180 = vector.shape_cast %179 : vector<10xf32> to vector<10x1xf32>
    %cst_61 = arith.constant 3.200000e+01 : f32
    %181 = vector.broadcast %cst_61 : f32 to vector<10x1xf32>
    %182 = arith.divf %180, %181 : vector<10x1xf32>
    %183 = vector.broadcast %173 : vector<10x1xf32> to vector<10x32xf32>
    %184 = arith.subf %159, %183 : vector<10x32xf32>
    %cst_62 = arith.constant 9.99999997E-7 : f32
    %185 = vector.broadcast %cst_62 : f32 to vector<10x1xf32>
    %186 = arith.addf %182, %185 : vector<10x1xf32>
    %187 = math.rsqrt %186 : vector<10x1xf32>
    %188 = vector.broadcast %187 : vector<10x1xf32> to vector<10x32xf32>
    %189 = arith.mulf %184, %188 : vector<10x32xf32>
    %190 = vector.broadcast %162 : vector<1x32xf32> to vector<10x32xf32>
    %191 = arith.mulf %189, %190 : vector<10x32xf32>
    %192 = vector.broadcast %163 : vector<1x32xf32> to vector<10x32xf32>
    %193 = arith.addf %191, %192 : vector<10x32xf32>
    %c1_63 = arith.constant 1 : index
    %c0_64 = arith.constant 0 : index
    %c0_65 = arith.constant 0 : index
    %194 = vector.load %arg5[%c1_63, %c0_64, %c0_65] : memref<2x32x96xf32, #tpu.memory_space<vmem>>, vector<1x32x96xf32>
    %195 = vector.shape_cast %194 : vector<1x32x96xf32> to vector<32x96xf32>
    %cst_66 = arith.constant dense<0.000000e+00> : vector<10x96xf32>
    %196 = tpu.matmul %193, %195, %cst_66 {dimension_numbers = #tpu.dot_dimension_numbers<[1], [0], [0], [1], [0, 0, 1, 1], [], []>} : vector<10x32xf32>, vector<32x96xf32>, vector<10x96xf32> -> vector<10x96xf32>
    %197 = vector.broadcast %168 : vector<1x96xf32> to vector<10x96xf32>
    %198 = arith.addf %196, %197 : vector<10x96xf32>
    %199 = vector.extract_strided_slice %198 {offsets = [0, 0], sizes = [10, 8], strides = [1, 1]} : vector<10x96xf32> to vector<10x8xf32>
    %200 = vector.extract_strided_slice %198 {offsets = [0, 32], sizes = [10, 8], strides = [1, 1]} : vector<10x96xf32> to vector<10x8xf32>
    %201 = vector.extract_strided_slice %198 {offsets = [0, 64], sizes = [10, 8], strides = [1, 1]} : vector<10x96xf32> to vector<10x8xf32>
    %cst_67 = arith.constant dense<0.000000e+00> : vector<10x10xf32>
    %202 = tpu.matmul %199, %200, %cst_67 {dimension_numbers = #tpu.dot_dimension_numbers<[1], [1], [0], [0], [0, 0, 1, 0], [], []>} : vector<10x8xf32>, vector<10x8xf32>, vector<10x10xf32> -> vector<10x10xf32>
    %203 = arith.addf %202, %5 : vector<10x10xf32>
    %cst_68 = arith.constant dense<0xFF800000> : vector<10xf32>
    %204 = vector.multi_reduction <maximumf>, %203, %cst_68 [1] : vector<10x10xf32> to vector<10xf32>
    %205 = vector.shape_cast %204 : vector<10xf32> to vector<10x1xf32>
    %206 = vector.broadcast %205 : vector<10x1xf32> to vector<10x10xf32>
    %207 = arith.subf %203, %206 : vector<10x10xf32>
    %208 = math.exp %207 : vector<10x10xf32>
    %cst_69 = arith.constant dense<0.000000e+00> : vector<10xf32>
    %209 = vector.multi_reduction <add>, %208, %cst_69 [1] : vector<10x10xf32> to vector<10xf32>
    %210 = vector.shape_cast %209 : vector<10xf32> to vector<10x1xf32>
    %211 = vector.broadcast %210 : vector<10x1xf32> to vector<10x10xf32>
    %212 = arith.divf %208, %211 : vector<10x10xf32>
    %cst_70 = arith.constant dense<0.000000e+00> : vector<10x8xf32>
    %213 = tpu.matmul %212, %201, %cst_70 {dimension_numbers = #tpu.dot_dimension_numbers<[1], [0], [0], [1], [0, 0, 1, 1], [], []>} : vector<10x10xf32>, vector<10x8xf32>, vector<10x8xf32> -> vector<10x8xf32>
    %214 = vector.extract_strided_slice %198 {offsets = [0, 8], sizes = [10, 8], strides = [1, 1]} : vector<10x96xf32> to vector<10x8xf32>
    %215 = vector.extract_strided_slice %198 {offsets = [0, 40], sizes = [10, 8], strides = [1, 1]} : vector<10x96xf32> to vector<10x8xf32>
    %216 = vector.extract_strided_slice %198 {offsets = [0, 72], sizes = [10, 8], strides = [1, 1]} : vector<10x96xf32> to vector<10x8xf32>
    %cst_71 = arith.constant dense<0.000000e+00> : vector<10x10xf32>
    %217 = tpu.matmul %214, %215, %cst_71 {dimension_numbers = #tpu.dot_dimension_numbers<[1], [1], [0], [0], [0, 0, 1, 0], [], []>} : vector<10x8xf32>, vector<10x8xf32>, vector<10x10xf32> -> vector<10x10xf32>
    %218 = arith.addf %217, %5 : vector<10x10xf32>
    %cst_72 = arith.constant dense<0xFF800000> : vector<10xf32>
    %219 = vector.multi_reduction <maximumf>, %218, %cst_72 [1] : vector<10x10xf32> to vector<10xf32>
    %220 = vector.shape_cast %219 : vector<10xf32> to vector<10x1xf32>
    %221 = vector.broadcast %220 : vector<10x1xf32> to vector<10x10xf32>
    %222 = arith.subf %218, %221 : vector<10x10xf32>
    %223 = math.exp %222 : vector<10x10xf32>
    %cst_73 = arith.constant dense<0.000000e+00> : vector<10xf32>
    %224 = vector.multi_reduction <add>, %223, %cst_73 [1] : vector<10x10xf32> to vector<10xf32>
    %225 = vector.shape_cast %224 : vector<10xf32> to vector<10x1xf32>
    %226 = vector.broadcast %225 : vector<10x1xf32> to vector<10x10xf32>
    %227 = arith.divf %223, %226 : vector<10x10xf32>
    %cst_74 = arith.constant dense<0.000000e+00> : vector<10x8xf32>
    %228 = tpu.matmul %227, %216, %cst_74 {dimension_numbers = #tpu.dot_dimension_numbers<[1], [0], [0], [1], [0, 0, 1, 1], [], []>} : vector<10x10xf32>, vector<10x8xf32>, vector<10x8xf32> -> vector<10x8xf32>
    %229 = vector.extract_strided_slice %198 {offsets = [0, 16], sizes = [10, 8], strides = [1, 1]} : vector<10x96xf32> to vector<10x8xf32>
    %230 = vector.extract_strided_slice %198 {offsets = [0, 48], sizes = [10, 8], strides = [1, 1]} : vector<10x96xf32> to vector<10x8xf32>
    %231 = vector.extract_strided_slice %198 {offsets = [0, 80], sizes = [10, 8], strides = [1, 1]} : vector<10x96xf32> to vector<10x8xf32>
    %cst_75 = arith.constant dense<0.000000e+00> : vector<10x10xf32>
    %232 = tpu.matmul %229, %230, %cst_75 {dimension_numbers = #tpu.dot_dimension_numbers<[1], [1], [0], [0], [0, 0, 1, 0], [], []>} : vector<10x8xf32>, vector<10x8xf32>, vector<10x10xf32> -> vector<10x10xf32>
    %233 = arith.addf %232, %5 : vector<10x10xf32>
    %cst_76 = arith.constant dense<0xFF800000> : vector<10xf32>
    %234 = vector.multi_reduction <maximumf>, %233, %cst_76 [1] : vector<10x10xf32> to vector<10xf32>
    %235 = vector.shape_cast %234 : vector<10xf32> to vector<10x1xf32>
    %236 = vector.broadcast %235 : vector<10x1xf32> to vector<10x10xf32>
    %237 = arith.subf %233, %236 : vector<10x10xf32>
    %238 = math.exp %237 : vector<10x10xf32>
    %cst_77 = arith.constant dense<0.000000e+00> : vector<10xf32>
    %239 = vector.multi_reduction <add>, %238, %cst_77 [1] : vector<10x10xf32> to vector<10xf32>
    %240 = vector.shape_cast %239 : vector<10xf32> to vector<10x1xf32>
    %241 = vector.broadcast %240 : vector<10x1xf32> to vector<10x10xf32>
    %242 = arith.divf %238, %241 : vector<10x10xf32>
    %cst_78 = arith.constant dense<0.000000e+00> : vector<10x8xf32>
    %243 = tpu.matmul %242, %231, %cst_78 {dimension_numbers = #tpu.dot_dimension_numbers<[1], [0], [0], [1], [0, 0, 1, 1], [], []>} : vector<10x10xf32>, vector<10x8xf32>, vector<10x8xf32> -> vector<10x8xf32>
    %244 = vector.extract_strided_slice %198 {offsets = [0, 24], sizes = [10, 8], strides = [1, 1]} : vector<10x96xf32> to vector<10x8xf32>
    %245 = vector.extract_strided_slice %198 {offsets = [0, 56], sizes = [10, 8], strides = [1, 1]} : vector<10x96xf32> to vector<10x8xf32>
    %246 = vector.extract_strided_slice %198 {offsets = [0, 88], sizes = [10, 8], strides = [1, 1]} : vector<10x96xf32> to vector<10x8xf32>
    %cst_79 = arith.constant dense<0.000000e+00> : vector<10x10xf32>
    %247 = tpu.matmul %244, %245, %cst_79 {dimension_numbers = #tpu.dot_dimension_numbers<[1], [1], [0], [0], [0, 0, 1, 0], [], []>} : vector<10x8xf32>, vector<10x8xf32>, vector<10x10xf32> -> vector<10x10xf32>
    %248 = arith.addf %247, %5 : vector<10x10xf32>
    %cst_80 = arith.constant dense<0xFF800000> : vector<10xf32>
    %249 = vector.multi_reduction <maximumf>, %248, %cst_80 [1] : vector<10x10xf32> to vector<10xf32>
    %250 = vector.shape_cast %249 : vector<10xf32> to vector<10x1xf32>
    %251 = vector.broadcast %250 : vector<10x1xf32> to vector<10x10xf32>
    %252 = arith.subf %248, %251 : vector<10x10xf32>
    %253 = math.exp %252 : vector<10x10xf32>
    %cst_81 = arith.constant dense<0.000000e+00> : vector<10xf32>
    %254 = vector.multi_reduction <add>, %253, %cst_81 [1] : vector<10x10xf32> to vector<10xf32>
    %255 = vector.shape_cast %254 : vector<10xf32> to vector<10x1xf32>
    %256 = vector.broadcast %255 : vector<10x1xf32> to vector<10x10xf32>
    %257 = arith.divf %253, %256 : vector<10x10xf32>
    %cst_82 = arith.constant dense<0.000000e+00> : vector<10x8xf32>
    %258 = tpu.matmul %257, %246, %cst_82 {dimension_numbers = #tpu.dot_dimension_numbers<[1], [0], [0], [1], [0, 0, 1, 1], [], []>} : vector<10x10xf32>, vector<10x8xf32>, vector<10x8xf32> -> vector<10x8xf32>
    %259 = tpu.concatenate %213, %228, %243, %258 in 1 : vector<10x8xf32>, vector<10x8xf32>, vector<10x8xf32>, vector<10x8xf32> -> vector<10x32xf32>
    %c1_83 = arith.constant 1 : index
    %c0_84 = arith.constant 0 : index
    %c0_85 = arith.constant 0 : index
    %260 = vector.load %arg6[%c1_83, %c0_84, %c0_85] : memref<2x32x32xf32, #tpu.memory_space<vmem>>, vector<1x32x32xf32>
    %261 = vector.shape_cast %260 : vector<1x32x32xf32> to vector<32x32xf32>
    %cst_86 = arith.constant dense<0.000000e+00> : vector<10x32xf32>
    %262 = tpu.matmul %259, %261, %cst_86 {dimension_numbers = #tpu.dot_dimension_numbers<[1], [0], [0], [1], [0, 0, 1, 1], [], []>} : vector<10x32xf32>, vector<32x32xf32>, vector<10x32xf32> -> vector<10x32xf32>
    %263 = arith.addf %159, %262 : vector<10x32xf32>
    %264 = vector.broadcast %166 : vector<1x32xf32> to vector<10x32xf32>
    %265 = arith.addf %263, %264 : vector<10x32xf32>
    %cst_87 = arith.constant dense<0.000000e+00> : vector<10xf32>
    %266 = vector.multi_reduction <add>, %265, %cst_87 [1] : vector<10x32xf32> to vector<10xf32>
    %267 = vector.shape_cast %266 : vector<10xf32> to vector<10x1xf32>
    %cst_88 = arith.constant 3.200000e+01 : f32
    %268 = vector.broadcast %cst_88 : f32 to vector<10x1xf32>
    %269 = arith.divf %267, %268 : vector<10x1xf32>
    %270 = vector.broadcast %269 : vector<10x1xf32> to vector<10x32xf32>
    %271 = arith.subf %265, %270 : vector<10x32xf32>
    %272 = vector.broadcast %269 : vector<10x1xf32> to vector<10x32xf32>
    %273 = arith.subf %265, %272 : vector<10x32xf32>
    %274 = arith.mulf %271, %273 : vector<10x32xf32>
    %cst_89 = arith.constant dense<0.000000e+00> : vector<10xf32>
    %275 = vector.multi_reduction <add>, %274, %cst_89 [1] : vector<10x32xf32> to vector<10xf32>
    %276 = vector.shape_cast %275 : vector<10xf32> to vector<10x1xf32>
    %cst_90 = arith.constant 3.200000e+01 : f32
    %277 = vector.broadcast %cst_90 : f32 to vector<10x1xf32>
    %278 = arith.divf %276, %277 : vector<10x1xf32>
    %279 = vector.broadcast %269 : vector<10x1xf32> to vector<10x32xf32>
    %280 = arith.subf %265, %279 : vector<10x32xf32>
    %cst_91 = arith.constant 9.99999997E-7 : f32
    %281 = vector.broadcast %cst_91 : f32 to vector<10x1xf32>
    %282 = arith.addf %278, %281 : vector<10x1xf32>
    %283 = math.rsqrt %282 : vector<10x1xf32>
    %284 = vector.broadcast %283 : vector<10x1xf32> to vector<10x32xf32>
    %285 = arith.mulf %280, %284 : vector<10x32xf32>
    %286 = vector.broadcast %164 : vector<1x32xf32> to vector<10x32xf32>
    %287 = arith.mulf %285, %286 : vector<10x32xf32>
    %288 = vector.broadcast %165 : vector<1x32xf32> to vector<10x32xf32>
    %289 = arith.addf %287, %288 : vector<10x32xf32>
    %c1_92 = arith.constant 1 : index
    %c0_93 = arith.constant 0 : index
    %c0_94 = arith.constant 0 : index
    %290 = vector.load %arg7[%c1_92, %c0_93, %c0_94] : memref<2x32x128xf32, #tpu.memory_space<vmem>>, vector<1x32x128xf32>
    %291 = vector.shape_cast %290 : vector<1x32x128xf32> to vector<32x128xf32>
    %cst_95 = arith.constant dense<0.000000e+00> : vector<10x128xf32>
    %292 = tpu.matmul %289, %291, %cst_95 {dimension_numbers = #tpu.dot_dimension_numbers<[1], [0], [0], [1], [0, 0, 1, 1], [], []>} : vector<10x32xf32>, vector<32x128xf32>, vector<10x128xf32> -> vector<10x128xf32>
    %293 = vector.broadcast %169 : vector<1x128xf32> to vector<10x128xf32>
    %294 = arith.addf %292, %293 : vector<10x128xf32>
    %cst_96 = arith.constant 5.000000e-01 : f32
    %295 = vector.broadcast %cst_96 : f32 to vector<10x128xf32>
    %296 = arith.mulf %295, %294 : vector<10x128xf32>
    %cst_97 = arith.constant 4.471500e-02 : f32
    %297 = vector.broadcast %cst_97 : f32 to vector<10x128xf32>
    %298 = arith.mulf %297, %294 : vector<10x128xf32>
    %299 = arith.mulf %298, %294 : vector<10x128xf32>
    %300 = arith.mulf %299, %294 : vector<10x128xf32>
    %301 = arith.addf %294, %300 : vector<10x128xf32>
    %cst_98 = arith.constant 0.797884583 : f32
    %302 = vector.broadcast %cst_98 : f32 to vector<10x128xf32>
    %303 = arith.mulf %302, %301 : vector<10x128xf32>
    %304 = math.tanh %303 : vector<10x128xf32>
    %cst_99 = arith.constant 1.000000e+00 : f32
    %305 = vector.broadcast %cst_99 : f32 to vector<10x128xf32>
    %306 = arith.addf %305, %304 : vector<10x128xf32>
    %307 = arith.mulf %296, %306 : vector<10x128xf32>
    %c1_100 = arith.constant 1 : index
    %c0_101 = arith.constant 0 : index
    %c0_102 = arith.constant 0 : index
    %308 = vector.load %arg8[%c1_100, %c0_101, %c0_102] : memref<2x128x32xf32, #tpu.memory_space<vmem>>, vector<1x128x32xf32>
    %309 = vector.shape_cast %308 : vector<1x128x32xf32> to vector<128x32xf32>
    %cst_103 = arith.constant dense<0.000000e+00> : vector<10x32xf32>
    %310 = tpu.matmul %307, %309, %cst_103 {dimension_numbers = #tpu.dot_dimension_numbers<[1], [0], [0], [1], [0, 0, 1, 1], [], []>} : vector<10x128xf32>, vector<128x32xf32>, vector<10x32xf32> -> vector<10x32xf32>
    %311 = arith.addf %265, %310 : vector<10x32xf32>
    %312 = vector.broadcast %167 : vector<1x32xf32> to vector<10x32xf32>
    %313 = arith.addf %311, %312 : vector<10x32xf32>
    %c0_104 = arith.constant 0 : index
    %c0_105 = arith.constant 0 : index
    %314 = vector.load %arg4[%c0_104, %c0_105] : memref<2x10xf32, #tpu.memory_space<vmem>>, vector<2x10xf32>
    %cst_106 = arith.constant dense<0.000000e+00> : vector<2x32xf32>
    %315 = tpu.matmul %314, %313, %cst_106 {dimension_numbers = #tpu.dot_dimension_numbers<[1], [0], [0], [1], [0, 0, 1, 1], [], []>} : vector<2x10xf32>, vector<10x32xf32>, vector<2x32xf32> -> vector<2x32xf32>
    %c0_107 = arith.constant 0 : index
    %c0_108 = arith.constant 0 : index
    %316 = vector.load %arg10[%c0_107, %c0_108] : memref<2x32xf32, #tpu.memory_space<vmem>>, vector<2x32xf32>
    %317 = vector.extract_strided_slice %316 {offsets = [0, 0], sizes = [1, 32], strides = [1, 1]} : vector<2x32xf32> to vector<1x32xf32>
    %318 = vector.extract_strided_slice %316 {offsets = [1, 0], sizes = [1, 32], strides = [1, 1]} : vector<2x32xf32> to vector<1x32xf32>
    %cst_109 = arith.constant dense<0.000000e+00> : vector<2xf32>
    %319 = vector.multi_reduction <add>, %315, %cst_109 [1] : vector<2x32xf32> to vector<2xf32>
    %320 = vector.shape_cast %319 : vector<2xf32> to vector<2x1xf32>
    %cst_110 = arith.constant 3.200000e+01 : f32
    %321 = vector.broadcast %cst_110 : f32 to vector<2x1xf32>
    %322 = arith.divf %320, %321 : vector<2x1xf32>
    %323 = vector.broadcast %322 : vector<2x1xf32> to vector<2x32xf32>
    %324 = arith.subf %315, %323 : vector<2x32xf32>
    %325 = vector.broadcast %322 : vector<2x1xf32> to vector<2x32xf32>
    %326 = arith.subf %315, %325 : vector<2x32xf32>
    %327 = arith.mulf %324, %326 : vector<2x32xf32>
    %cst_111 = arith.constant dense<0.000000e+00> : vector<2xf32>
    %328 = vector.multi_reduction <add>, %327, %cst_111 [1] : vector<2x32xf32> to vector<2xf32>
    %329 = vector.shape_cast %328 : vector<2xf32> to vector<2x1xf32>
    %cst_112 = arith.constant 3.200000e+01 : f32
    %330 = vector.broadcast %cst_112 : f32 to vector<2x1xf32>
    %331 = arith.divf %329, %330 : vector<2x1xf32>
    %332 = vector.broadcast %322 : vector<2x1xf32> to vector<2x32xf32>
    %333 = arith.subf %315, %332 : vector<2x32xf32>
    %cst_113 = arith.constant 9.99999997E-7 : f32
    %334 = vector.broadcast %cst_113 : f32 to vector<2x1xf32>
    %335 = arith.addf %331, %334 : vector<2x1xf32>
    %336 = math.rsqrt %335 : vector<2x1xf32>
    %337 = vector.broadcast %336 : vector<2x1xf32> to vector<2x32xf32>
    %338 = arith.mulf %333, %337 : vector<2x32xf32>
    %339 = vector.broadcast %317 : vector<1x32xf32> to vector<2x32xf32>
    %340 = arith.mulf %338, %339 : vector<2x32xf32>
    %341 = vector.broadcast %318 : vector<1x32xf32> to vector<2x32xf32>
    %342 = arith.addf %340, %341 : vector<2x32xf32>
    %c0_114 = arith.constant 0 : index
    %c0_115 = arith.constant 0 : index
    %343 = vector.load %arg11[%c0_114, %c0_115] : memref<2x32xf32, #tpu.memory_space<vmem>>, vector<2x32xf32>
    tpu.vector_store %arg11[%c0_114, %c0_115], %342 {strides = array<i32>} : memref<2x32xf32, #tpu.memory_space<vmem>>, vector<2x32xf32>,
    return
  }
}

</mosaic_0001>

<bundles_post_ra>
// kernel: tile.9
= control target key start
LH: loop header
LB: loop body
LE: loop exit
PB: predicated region body
PF: predicated region fallthrough
CT: control target
= control target key end

     0   :  { %vm3_vm0 = vcmask 261120   ;;  %s34_s0 = inlined_call_operand.vmem [shape: f32[2,5,32], index: 0, kind: input, shape index: {}]   ;;  %s35_s1 = inlined_call_operand.vmem [shape: f32[10,32], index: 1, kind: output, shape index: {}]  }
   0x1   :  { %v2_v0 = vld [vmem:[%s34_s0] sm:$0x1f]   ;;  %v10_v1 = vld [vmem:[%s34_s0 + $0x8] sm:$0x1f]  }
   0x2   :  { %4 = vst.msk [vmem:[%s35_s1] sm:$0x1f] %vm3_vm0, %v2_v0   ;;  %11 = vst.msk [vmem:[%s35_s1 + $0x5] sm:$0x1f] %vm3_vm0, %v10_v1  }

// kernel: vit_extractor_forward.1
= control target key start
LH: loop header
LB: loop body
LE: loop exit
PB: predicated region body
PF: predicated region fallthrough
CT: control target
= control target key end

     0   :  { %v3835_v3 = vmov 0.0|0.0   ;;  %vm69_vm0 = vcmask 523264   ;;  %s4641_s0 = inlined_call_operand.vmem [shape: f32[10,192], index: 0, kind: input, shape index: {}]   ;;  %s4642_s1 = inlined_call_operand.vmem [shape: f32[192,32], index: 1, kind: input, shape index: {}]   ;;  %s4643_s2 = inlined_call_operand.vmem [shape: f32[10,32], index: 2, kind: input, shape index: {}]   ;;  %s4644_s3 = inlined_call_operand.vmem [shape: f32[10,10], index: 3, kind: input, shape index: {}]   ;;  %s4645_s4 = inlined_call_operand.vmem [shape: f32[2,10], index: 4, kind: input, shape index: {}]   ;;  %s4646_s5 = inlined_call_operand.vmem [shape: f32[2,32,96], index: 5, kind: input, shape index: {}]   ;;  %s4647_s6 = inlined_call_operand.vmem [shape: f32[2,32,32], index: 6, kind: input, shape index: {}]   ;;  %s4648_s7 = inlined_call_operand.vmem [shape: f32[2,32,128], index: 7, kind: input, shape index: {}]   ;;  %s4649_s8 = inlined_call_operand.vmem [shape: f32[2,128,32], index: 8, kind: input, shape index: {}]   ;;  %s4650_s9 = inlined_call_operand.vmem [shape: f32[2,8,128], index: 9, kind: input, shape index: {}]   ;;  %s4651_s10 = inlined_call_operand.vmem [shape: f32[2,32], index: 10, kind: input, shape index: {}]   ;;  %s4652_s11 = inlined_call_operand.hbm [shape: f32[2,32], index: 11, kind: output, shape index: {}]  }
   0x1   :  { %v43_v0 = vld [vmem:[%s4642_s1] sm:$0xff]  ;;  %v44_v1 = vld [vmem:[%s4642_s1 + $0x8] sm:$0xff]  ;;  %v45_v2 = vld [vmem:[%s4642_s1 + $0x10] sm:$0xff]  ;;  %3372 = vmatprep.subr.bf16.mxu0 %v3835_v3 }
   0x2   :  { %v3373_v4 = vpack.c.bf16 %v44_v1, %v43_v0  ;;  %v46_v5 = vld [vmem:[%s4642_s1 + $0x18] sm:$0xff]  ;;  %v47_v7 = vld [vmem:[%s4642_s1 + $0x20] sm:$0xff]  ;;  %v48_v8 = vld [vmem:[%s4642_s1 + $0x28] sm:$0xff] }
   0x3   :  { %v3376_v6 = vpack.c.bf16 %v46_v5, %v45_v2  ;;  %v3379_v9 = vpack.c.bf16 %v48_v8, %v47_v7  ;;  %v49_v10 = vld [vmem:[%s4642_s1 + $0x30] sm:$0xff]  ;;  %v50_v11 = vld [vmem:[%s4642_s1 + $0x38] sm:$0xff]  ;;  %v40_v12 = vld [vmem:[%s4641_s0 + $0x8] sm:$0xff] }
   0x4   :  { %3374 = vmatpush1.bf16.msra.mxu0 %v3373_v4  ;;  %2877 = vmatprep.mubr.msk.f32.mxu0 %vm69_vm0, %v40_v12 }
   0x5   :  { %3375 = vmatprep.subr.bf16.mxu0 %v3835_v3 }
   0x8   :  { %3377 = vmatpush1.bf16.msra.mxu0 %v3376_v6 }
   0x9   :  { %3378 = vmatprep.subr.bf16.mxu0 %v3835_v3 }
   0xa   :  { %16 = vsyncpa [#allocation3], 0  ;;  %v3382_v13 = vpack.c.bf16 %v50_v11, %v49_v10  ;;  %v51_v14 = vld [vmem:[%s4642_s1 + $0x40] sm:$0xff]  ;;  %v52_v15 = vld [vmem:[%s4642_s1 + $0x48] sm:$0xff]  ;;  %vm154_vm1 = vcmask 261120   ;;  %vm158_vm2 = vcmask 254976   ;;  %v183_v6 = vlaneseq }
   0xb   :  { %v3385_v16 = vpack.c.bf16 %v52_v15, %v51_v14  ;;  %v53_v17 = vld [vmem:[%s4642_s1 + $0x50] sm:$0xff]  ;;  %v54_v18 = vld [vmem:[%s4642_s1 + $0x58] sm:$0xff]  ;;  %v55_v20 = vld [vmem:[%s4642_s1 + $0x60] sm:$0xff]  ;;  %vm290_vm3 = vcmask 64512   ;;  %s3836_s27 = smov 96   ;;  %s3837_s28 = smov 88  }
   0xc   :  { %3380 = vmatpush1.bf16.msra.mxu0 %v3379_v9  ;;  %v3388_v19 = vpack.c.bf16 %v54_v18, %v53_v17  ;;  %v56_v21 = vld [vmem:[%s4642_s1 + $0x68] sm:$0xff]  ;;  %v57_v23 = vld [vmem:[%s4642_s1 + $0x70] sm:$0xff]  ;;  %v58_v24 = vld [vmem:[%s4642_s1 + $0x78] sm:$0xff]  ;;  %v4042_v10 = vshrl.u32 %v183_v6, 7  ;;  %s3838_s29 = smov 120   ;;  %vm374_vm5 = vcmask 80896  }
   0xd   :  { %3381 = vmatprep.subr.bf16.mxu0 %v3835_v3  ;;  %v3391_v22 = vpack.c.bf16 %v56_v21, %v55_v20  ;;  %v3394_v25 = vpack.c.bf16 %v58_v24, %v57_v23  ;;  %v59_v26 = vld [vmem:[%s4642_s1 + $0x80] sm:$0xff]  ;;  %v60_v27 = vld [vmem:[%s4642_s1 + $0x88] sm:$0xff]  ;;  %v61_v29 = vld [vmem:[%s4642_s1 + $0x90] sm:$0xff]  ;;  %vm378_vm6 = vcmask 74752   ;;  %s3839_s15 = smov 64   ;;  %vm409_vm7 = vcmask 1041408  }
   0xe   :  { %v3397_v28 = vpack.c.bf16 %v60_v27, %v59_v26  ;;  %v62_v30 = vld [vmem:[%s4642_s1 + $0x98] sm:$0xff]  ;;  %v63_v32 = vld [vmem:[%s4642_s1 + $0xa0] sm:$0xff]  ;;  %v64_v33 = vld [vmem:[%s4642_s1 + $0xa8] sm:$0xff]  ;;  %v4045_v12 = vsub.s32 0, %v4042_v10  ;;  %v4053_v14 = vsub.s32 1, %v4042_v10  ;;  %vm3840_vm8 = vmmov 1  }
   0xf   :  { %v3400_v31 = vpack.c.bf16 %v62_v30, %v61_v29  ;;  %v3403_v34 = vpack.c.bf16 %v64_v33, %v63_v32  ;;  %v65_v35 = vld [vmem:[%s4642_s1 + $0xb0] sm:$0xff]  ;;  %v66_v36 = vld [vmem:[%s4642_s1 + $0xb8] sm:$0xff]  ;;  %v39_v38 = vld [vmem:[%s4641_s0] sm:$0xff]  ;;  %s3841_s1 = smov 56   ;;  %s3842_s16 = smov 112   ;;  %vm1116_vm10 = vcmask 130048  }
  0x10   :  { %3383 = vmatpush1.bf16.msra.mxu0 %v3382_v13  ;;  %v3406_v37 = vpack.c.bf16 %v66_v36, %v65_v35  ;;  %v42_v39 = vld [vmem:[%s4641_s0 + $0x18] sm:$0x3]  ;;  %v41_v40 = vld [vmem:[%s4641_s0 + $0x10] sm:$0x3]  ;;  %v67_v41 = vld [vmem:[%s4643_s2] sm:$0xff]  ;;  %s3843_s17 = smov 80  }
  0x11   :  { %3384 = vmatprep.subr.bf16.mxu0 %v3835_v3  ;;  %v68_v45 = vld [vmem:[%s4643_s2 + $0x8] sm:$0x3]  ;;  %v195_v61 = vld [vmem:[%s4646_s5] sm:$0xff]  ;;  %v197_v0 = vld [vmem:[%s4646_s5 + $0x10] sm:$0xff]  ;;  %s3844_s18 = smov 48   ;;  %s3845_s0 = smov 104  }
  0x12   :  { %v196_v62 = vld [vmem:[%s4646_s5 + $0x8] sm:$0xff]  ;;  %v198_v1 = vld [vmem:[%s4646_s5 + $0x18] sm:$0xff]  ;;  %v4050_v13 = vld [vmem:[%s4650_s9] sm:$0xff]  ;;  %s3846_s2 = smov 72   ;;  %s3847_s19 = smov 40   ;;  %vm1119_vm11 = vcmask 195584  }
  0x13   :  { %v3408_v63 = vpack.c.bf16 %v196_v62, %v195_v61  ;;  %v3412_v2 = vpack.c.bf16 %v198_v1, %v197_v0  ;;  %v186_v15 = vrot.slane %v4050_v13, %v4045_v12  ;;  %v192_v18 = vrot.slane %v4050_v13, %v4053_v14  ;;  %vm4085_vm4 = vmpackc.low %vm290_vm3, %vm290_vm3  ;;  %s3848_s20 = smov 8   ;;  %s4655_s21 = smov 16  }
  0x14   :  { %3386 = vmatpush1.bf16.msra.mxu0 %v3385_v16  ;;  %vm4113_vm9 = vmpackc.low %vm409_vm7, %vm3840_vm8  ;;  %s4653_s14 = smov 24   ;;  %vm3851_vm12 = vmmov 0  }
  0x15   :  { %3387 = vmatprep.subr.bf16.mxu0 %v3835_v3 }
  0x18   :  { %3389 = vmatpush1.bf16.msra.mxu0 %v3388_v19 }
  0x19   :  { %3390 = vmatprep.subr.bf16.mxu0 %v3835_v3 }
  0x1c   :  { %3392 = vmatpush1.bf16.msra.mxu0 %v3391_v22 }
  0x1d   :  { %3393 = vmatprep.subr.bf16.mxu0 %v3835_v3 }
  0x20   :  { %3395 = vmatpush1.bf16.msra.mxu0 %v3394_v25  ;;  %v201_v25 = vsub.s32 6, %v4042_v10 }
  0x21   :  { %3396 = vmatprep.subr.bf16.mxu0 %v3835_v3 }
  0x22   :  { %v202_v26 = vrot.slane %v4050_v13, %v201_v25 }
  0x24   :  { %3398 = vmatpush1.bf16.msra.mxu0 %v3397_v28 }
  0x25   :  { %3399 = vmatprep.subr.bf16.mxu0 %v3835_v3 }
  0x28   :  { %3401 = vmatpush1.bf16.msra.mxu0 %v3400_v31 }
  0x29   :  { %3402 = vmatprep.subr.bf16.mxu0 %v3835_v3 }
  0x2c   :  { %3404 = vmatpush1.bf16.msra.mxu0 %v3403_v34 }
  0x2d   :  { %3405 = vmatprep.subr.bf16.mxu0 %v3835_v3 }
  0x30   :  { %3407 = vmatpush1.bf16.msra.mxu0 %v3406_v37  ;;  %v4098_v37 = vld [vmem:[%s4644_s3] sm:$0xff] }
  0x31   :  { %3409 = vmatprep.subr.bf16.mxu0 %v3408_v63 }
  0x33   :  { %141 = vmatmul.mubr.f32.vlgmr.msra.gmra.mrb[0].mxu0 %v39_v38 }
  0x34   :  { %2878 = vmatprep.mubr.msk.f32.mxu0 %vm69_vm0, %v42_v39  ;;  %3411 = vmatpush3.bf16.msra.mxu0 %v3408_v63  ;;  %v4103_v39 = vld [vmem:[%s4644_s3 + $0x8] sm:$0x3] }
  0x35   :  { %3413 = vmatprep.subr.bf16.mxu0 %v3412_v2 }
  0x37   :  { %146 = vmatmul.mubr.f32.gmra.mrb[2].mxu0 %v41_v40 }
  0x38   :  { %3415 = vmatpush3.bf16.msra.mxu0 %v3412_v2 }
 0x106   :  { %v142_v42 = vpop.f32.mrb[0].mxu0 }
 0x107   :  { %v4015_v43 = vadd.f32 %v142_v42, %v67_v41  ;;  %v144_v44 = vpop.f32.mrb[1].mxu0 }
 0x109   :  { %v155_v46 = vsel %vm154_vm1, %v4015_v43, 0.0 }
 0x10a   :  { %v147_v47 = vpop.f32.mrb[2].mxu0  ;;  %156 = vadd.xlane.f32.xlu0 %v155_v46 }
 0x10b   :  { %v4022_v48 = vadd.f32 %v147_v47, %v68_v45  ;;  %v149_v49 = vpop.f32.mrb[3].mxu0 }
 0x10d   :  { %v159_v50 = vsel %vm158_vm2, %v4022_v48, 0.0 }
 0x10e   :  { %160 = vadd.xlane.f32.xlu0 %v159_v50 }
 0x197   :  { %v157_v51 = vpop.xlane.xlu0 %156 }
 0x198   :  { %v163_v52 = vmul.f32 0.03125, %v157_v51 }
 0x19a   :  { %v165_v53 = vsub.f32 %v4015_v43, %v163_v52 }
 0x19b   :  { %v161_v54 = vpop.xlane.xlu0 %160 }
 0x19c   :  { %v164_v55 = vmul.f32 0.03125, %v161_v54  ;;  %v167_v56 = vmul.f32 %v165_v53, %v165_v53 }
 0x19e   :  { %v166_v57 = vsub.f32 %v4022_v48, %v164_v55  ;;  %v169_v58 = vsel %vm154_vm1, %v167_v56, 0.0 }
 0x19f   :  { %170 = vadd.xlane.f32.xlu1 %v169_v58 }
 0x1a0   :  { %v168_v59 = vmul.f32 %v166_v57, %v166_v57 }
 0x1a2   :  { %v172_v60 = vsel %vm158_vm2, %v168_v59, 0.0 }
 0x1a3   :  { %173 = vadd.xlane.f32.xlu1 %v172_v60 }
 0x22c   :  { %v171_v4 = vpop.xlane.xlu1 %170 }
 0x22d   :  { %v175_v5 = vmul.f32 0.03125, %v171_v4 }
 0x22f   :  { %v177_v7 = vadd.f32 1e-06, %v175_v5 }
 0x230   :  { %v174_v8 = vpop.xlane.xlu1 %173 }
 0x231   :  { %3719 = vrsqrt.f32 %v177_v7  ;;  %v176_v9 = vmul.f32 0.03125, %v174_v8 }
 0x233   :  { %v178_v11 = vadd.f32 1e-06, %v176_v9 }
 0x235   :  { %3721 = vrsqrt.f32 %v178_v11 }
 0x23b   :  { %v3720_v16 = vpop.eup %3719 }
 0x23c   :  { %v181_v17 = vmul.f32 %v3720_v16, %v165_v53 }
 0x23e   :  { %v187_v19 = vmul.f32 %v186_v15, %v181_v17 }
 0x23f   :  { %v3722_v20 = vpop.eup %3721 }
 0x240   :  { %v182_v21 = vmul.f32 %v3722_v20, %v166_v57  ;;  %v193_v22 = vadd.f32 %v192_v18, %v187_v19 }
 0x242   :  { %v188_v23 = vmul.f32 %v186_v15, %v182_v21  ;;  %3125 = vmatprep.mubr.msk.f32.mxu0 %vm154_vm1, %v193_v22 }
 0x244   :  { %v194_v24 = vadd.f32 %v192_v18, %v188_v23 }
 0x246   :  { %3126 = vmatmul.mubr.msk.f32.vlgmr.msra.gmra.mrb[4].mxu0 %vm154_vm1, %v194_v24 }
 0x319   :  { %v3127_v27 = vpop.f32.mrb[4].mxu0 }
 0x31a   :  { %v4065_v28 = vadd.f32 %v3127_v27, %v202_v26  ;;  %v275_v29 = vpop.f32.mrb[5].mxu0 }
 0x31b   :  { %v4067_v30 = vadd.f32 %v275_v29, %v202_v26 }
 0x31d   :  { %3132 = vmatprep.mubr.msk.f32.mxu0 %vm290_vm3, %v4067_v30  ;;  %v4073_v31 = vpack.i.bf16 %v4065_v28, %v4067_v30 }
 0x31f   :  { %3640 = vrot.lane.b32.xlu0 %v4073_v31, %s3836_s27 }
 0x323   :  { %3650 = vrot.lane.b32.xlu0 %v4073_v31, %s3837_s28 }
 0x327   :  { %487 = vrot.lane.b32.xlu0 %v4067_v30, %s3838_s29 }
 0x32b   :  { %489 = vrot.lane.b32.xlu0 %v4065_v28, %s3838_s29 }
 0x391   :  { %v3641_v32 = vpop.permute.xlu0 %3640 }
 0x392   :  { %v3643_v33 = vunpack.i.h.bf16 %v3641_v32  ;;  %v3642_v34 = vunpack.i.l.bf16 %v3641_v32 }
 0x394   :  { %v3416_v36 = vpack.c.bf16 %v3643_v33, %v3642_v34 }
 0x395   :  { %v3651_v59 = vpop.permute.xlu0 %3650 }
 0x396   :  { %3418 = vmatprep.subr.msk.bf16.mxu0 %vm4085_vm4, %v3416_v36  ;;  %v3653_v61 = vunpack.i.h.bf16 %v3651_v59  ;;  %v3652_v62 = vunpack.i.l.bf16 %v3651_v59 }
 0x397   :  { %3421 = vmatpush3.bf16.xpose.msk.msra.mxu0 %vm4085_vm4, %v3416_v36 }
 0x398   :  { %v3428_v4 = vpack.c.bf16 %v3653_v61, %v3652_v62 }
 0x399   :  { %v488_v9 = vpop.permute.xlu0 %487 }
 0x39d   :  { %v490_v11 = vpop.permute.xlu0 %489 }
 0x39e   :  { %3133 = vmatmul.mubr.msk.f32.vlgmr.msra.gmra.mrb[6].mxu0 %vm290_vm3, %v4065_v28 }
 0x471   :  { %v3134_v38 = vpop.f32.mrb[6].mxu0 }
 0x472   :  { %v365_v40 = vpop.f32.mrb[7].mxu0  ;;  %v371_v42 = vadd.f32 %v3134_v38, %v4103_v39 }
 0x473   :  { %v366_v41 = vadd.f32 %v365_v40, %v4098_v37 }
 0x474   :  { %v379_v45 = vsel %vm378_vm6, %v371_v42, -inf }
 0x475   :  { %v375_v44 = vsel %vm374_vm5, %v366_v41, -inf }
 0x476   :  { %376 = vmax.xlane.f32.xlu1 %v375_v44 }
 0x47a   :  { %380 = vmax.xlane.f32.xlu1 %v379_v45 }
 0x503   :  { %v377_v46 = vpop.xlane.xlu1 %376 }
 0x504   :  { %v382_v47 = vsub.f32 %v366_v41, %v377_v46 }
 0x506   :  { %v384_v51 = vmul.f32 1.442695, %v382_v47 }
 0x507   :  { %v381_v49 = vpop.xlane.xlu1 %380 }
 0x508   :  { %v383_v50 = vsub.f32 %v371_v42, %v381_v49 }
 0x50a   :  { %v386_v52 = vmul.f32 1.442695, %v383_v50 }
 0x50c   :  { %3723 = vpow2.f32 %v386_v52 }
 0x50d   :  { %3725 = vpow2.f32 %v384_v51 }
 0x516   :  { %v3724_v53 = vpop.eup %3723 }
 0x517   :  { %v391_v54 = vsel %vm378_vm6, %v3724_v53, 0.0  ;;  %v3726_v55 = vpop.eup %3725 }
 0x518   :  { %392 = vadd.xlane.f32.xlu1 %v391_v54  ;;  %v388_v56 = vsel %vm374_vm5, %v3726_v55, 0.0 }
 0x51c   :  { %389 = vadd.xlane.f32.xlu1 %v388_v56 }
 0x52d   :  { %3645 = vrot.lane.b32.xlu1 %v4073_v31, %s3839_s15 }
 0x5a5   :  { %v393_v57 = vpop.xlane.xlu1 %392 }
 0x5a6   :  { %3727 = vrcp.f32 %v393_v57 }
 0x5a9   :  { %v390_v58 = vpop.xlane.xlu1 %389 }
 0x5aa   :  { %3729 = vrcp.f32 %v390_v58 }
 0x5ad   :  { %v3646_v60 = vpop.permute.xlu1 %3645 }
 0x5ae   :  { %v3648_v63 = vunpack.i.h.bf16 %v3646_v60  ;;  %v3647_v0 = vunpack.i.l.bf16 %v3646_v60 }
 0x5b0   :  { %v3422_v2 = vpack.c.bf16 %v3648_v63, %v3647_v0  ;;  %v3728_v5 = vpop.eup %3727 }
 0x5b1   :  { %v397_v8 = vmul.f32 %v3728_v5, %v3724_v53 }
 0x5b2   :  { %3424 = vmatprep.subr.msk.bf16.mxu1 %vm4113_vm9, %v3422_v2 }
 0x5b3   :  { %3427 = vmatpush3.bf16.msk.msra.mxu1 %vm4113_vm9, %v3422_v2 }
 0x5b4   :  { %v3730_v6 = vpop.eup %3729  ;;  %3430 = vmatprep.subr.msk.bf16.mxu1 %vm4085_vm4, %v3428_v4 }
 0x5b5   :  { %v395_v7 = vmul.f32 %v3730_v6, %v3726_v55 }
 0x5b7   :  { %3139 = vmatprep.mubr.msk.f32.mxu1 %vm374_vm5, %v395_v7 }
 0x5b8   :  { %3140 = vmatmul.mubr.msk.f32.vlgmr.msra.gmra.mrb[0].mxu1 %vm374_vm5, %v397_v8 }
 0x5b9   :  { %3146 = vmatprep.mubr.msk.f32.mxu1 %vm290_vm3, %v488_v9 }
 0x5bc   :  { %3433 = vmatpush3.bf16.xpose.msk.msra.mxu1 %vm4085_vm4, %v3428_v4 }
 0x5c3   :  { %3147 = vmatmul.mubr.msk.f32.vlgmr.msra.gmra.mrb[2].mxu1 %vm290_vm3, %v490_v11 }
 0x68b   :  { %v4129_v15 = vpop.f32.mrb[0].mxu1 }
 0x68c   :  { %v4131_v16 = vpop.f32.mrb[1].mxu1 }
 0x696   :  { %v3148_v17 = vpop.f32.mrb[2].mxu1 }
 0x697   :  { %v575_v18 = vadd.f32 %v3148_v17, %v4103_v39  ;;  %v569_v19 = vpop.f32.mrb[3].mxu1 }
 0x698   :  { %v570_v20 = vadd.f32 %v569_v19, %v4098_v37 }
 0x699   :  { %v581_v21 = vsel %vm378_vm6, %v575_v18, -inf }
 0x69a   :  { %582 = vmax.xlane.f32.xlu0 %v581_v21  ;;  %v578_v22 = vsel %vm374_vm5, %v570_v20, -inf }
 0x69b   :  { %579 = vmax.xlane.f32.xlu1 %v578_v22 }
 0x6ac   :  { %3655 = vrot.lane.b32.xlu1 %v4073_v31, %s3841_s1 }
 0x6b0   :  { %688 = vrot.lane.b32.xlu1 %v4067_v30, %s3842_s16 }
 0x6b4   :  { %690 = vrot.lane.b32.xlu1 %v4065_v28, %s3842_s16 }
 0x727   :  { %v583_v23 = vpop.xlane.xlu0 %582 }
 0x728   :  { %v585_v24 = vsub.f32 %v575_v18, %v583_v23  ;;  %v580_v26 = vpop.xlane.xlu1 %579 }
 0x729   :  { %v584_v27 = vsub.f32 %v570_v20, %v580_v26 }
 0x72a   :  { %v588_v29 = vmul.f32 1.442695, %v585_v24 }
 0x72b   :  { %v586_v32 = vmul.f32 1.442695, %v584_v27 }
 0x72c   :  { %3731 = vpow2.f32 %v588_v29  ;;  %v3656_v33 = vpop.permute.xlu1 %3655 }
 0x72d   :  { %v3658_v34 = vunpack.i.h.bf16 %v3656_v33  ;;  %v3657_v36 = vunpack.i.l.bf16 %v3656_v33  ;;  %3733 = vpow2.f32 %v586_v32 }
 0x72f   :  { %v3434_v38 = vpack.c.bf16 %v3658_v34, %v3657_v36 }
 0x730   :  { %v689_v56 = vpop.permute.xlu1 %688 }
 0x731   :  { %3436 = vmatprep.subr.msk.bf16.mxu1 %vm4113_vm9, %v3434_v38 }
 0x732   :  { %3439 = vmatpush3.bf16.msk.msra.mxu1 %vm4113_vm9, %v3434_v38 }
 0x734   :  { %v691_v57 = vpop.permute.xlu1 %690 }
 0x736   :  { %v3732_v40 = vpop.eup %3731 }
 0x737   :  { %v593_v41 = vsel %vm378_vm6, %v3732_v40, 0.0  ;;  %v3734_v42 = vpop.eup %3733 }
 0x738   :  { %594 = vadd.xlane.f32.xlu0 %v593_v41  ;;  %v590_v44 = vsel %vm374_vm5, %v3734_v42, 0.0 }
 0x73c   :  { %591 = vadd.xlane.f32.xlu0 %v590_v44 }
 0x752   :  { %3660 = vrot.lane.b32.xlu0 %v4073_v31, %s3843_s17 }
 0x7c5   :  { %v595_v45 = vpop.xlane.xlu0 %594 }
 0x7c6   :  { %3735 = vrcp.f32 %v595_v45 }
 0x7c9   :  { %v592_v46 = vpop.xlane.xlu0 %591 }
 0x7ca   :  { %3737 = vrcp.f32 %v592_v46 }
 0x7cd   :  { %v3661_v47 = vpop.permute.xlu0 %3660 }
 0x7ce   :  { %v3663_v49 = vunpack.i.h.bf16 %v3661_v47  ;;  %v3662_v50 = vunpack.i.l.bf16 %v3661_v47 }
 0x7d0   :  { %v3440_v51 = vpack.c.bf16 %v3663_v49, %v3662_v50  ;;  %v3736_v52 = vpop.eup %3735 }
 0x7d1   :  { %v599_v55 = vmul.f32 %v3736_v52, %v3732_v40 }
 0x7d2   :  { %3442 = vmatprep.subr.msk.bf16.mxu1 %vm4085_vm4, %v3440_v51 }
 0x7d4   :  { %v3738_v53 = vpop.eup %3737 }
 0x7d5   :  { %v597_v54 = vmul.f32 %v3738_v53, %v3734_v42 }
 0x7d7   :  { %3153 = vmatprep.mubr.msk.f32.mxu1 %vm374_vm5, %v597_v54 }
 0x7d8   :  { %3154 = vmatmul.mubr.msk.f32.vlgmr.msra.gmra.mrb[4].mxu1 %vm374_vm5, %v599_v55 }
 0x7d9   :  { %3445 = vmatpush3.bf16.xpose.msk.msra.mxu1 %vm4085_vm4, %v3440_v51  ;;  %3160 = vmatprep.mubr.msk.f32.mxu1 %vm290_vm3, %v689_v56 }
 0x7e0   :  { %3161 = vmatmul.mubr.msk.f32.vlgmr.msra.gmra.mrb[6].mxu1 %vm290_vm3, %v691_v57 }
 0x8ab   :  { %v4159_v58 = vpop.f32.mrb[4].mxu1 }
 0x8ac   :  { %v4161_v59 = vpop.f32.mrb[5].mxu1 }
 0x8b3   :  { %v3162_v60 = vpop.f32.mrb[6].mxu1 }
 0x8b4   :  { %v776_v61 = vadd.f32 %v3162_v60, %v4103_v39  ;;  %v770_v62 = vpop.f32.mrb[7].mxu1 }
 0x8b5   :  { %v771_v63 = vadd.f32 %v770_v62, %v4098_v37 }
 0x8b6   :  { %v782_v0 = vsel %vm378_vm6, %v776_v61, -inf }
 0x8b7   :  { %783 = vmax.xlane.f32.xlu0 %v782_v0  ;;  %v779_v2 = vsel %vm374_vm5, %v771_v63, -inf }
 0x8b8   :  { %780 = vmax.xlane.f32.xlu1 %v779_v2 }
 0x8c9   :  { %3665 = vrot.lane.b32.xlu1 %v4073_v31, %s3844_s18 }
 0x8cd   :  { %889 = vrot.lane.b32.xlu1 %v4067_v30, %s3845_s0 }
 0x8d1   :  { %891 = vrot.lane.b32.xlu1 %v4065_v28, %s3845_s0 }
 0x944   :  { %v784_v4 = vpop.xlane.xlu0 %783 }
 0x945   :  { %v786_v5 = vsub.f32 %v776_v61, %v784_v4  ;;  %v781_v6 = vpop.xlane.xlu1 %780 }
 0x946   :  { %v785_v7 = vsub.f32 %v771_v63, %v781_v6 }
 0x947   :  { %v789_v8 = vmul.f32 1.442695, %v786_v5 }
 0x948   :  { %v787_v9 = vmul.f32 1.442695, %v785_v7 }
 0x949   :  { %3739 = vpow2.f32 %v789_v8  ;;  %v3666_v11 = vpop.permute.xlu1 %3665 }
 0x94a   :  { %v3668_v17 = vunpack.i.h.bf16 %v3666_v11  ;;  %v3667_v18 = vunpack.i.l.bf16 %v3666_v11  ;;  %3741 = vpow2.f32 %v787_v9  ;;  %v1122_v9 = vld [vmem:[%s4647_s6] sm:$0xff]  ;;  %v1124_v11 = vld [vmem:[%s4647_s6 + $0x10] sm:$0xff] }
 0x94c   :  { %v3446_v19 = vpack.c.bf16 %v3668_v17, %v3667_v18  ;;  %v1125_v18 = vld [vmem:[%s4647_s6 + $0x18] sm:$0xff] }
 0x94d   :  { %v890_v38 = vpop.permute.xlu1 %889 }
 0x94e   :  { %3448 = vmatprep.subr.msk.bf16.mxu1 %vm4113_vm9, %v3446_v19 }
 0x94f   :  { %3451 = vmatpush3.bf16.msk.msra.mxu1 %vm4113_vm9, %v3446_v19  ;;  %v3468_v19 = vpack.c.bf16 %v1125_v18, %v1124_v11  ;;  %v1249_v11 = vsub.s32 3, %v4042_v10 }
 0x951   :  { %v892_v40 = vpop.permute.xlu1 %891 }
 0x953   :  { %v3740_v30 = vpop.eup %3739 }
 0x954   :  { %v794_v28 = vsel %vm378_vm6, %v3740_v30, 0.0  ;;  %v3742_v20 = vpop.eup %3741 }
 0x955   :  { %795 = vadd.xlane.f32.xlu0 %v794_v28  ;;  %v791_v21 = vsel %vm374_vm5, %v3742_v20, 0.0 }
 0x959   :  { %792 = vadd.xlane.f32.xlu0 %v791_v21 }
 0x96f   :  { %3670 = vrot.lane.b32.xlu0 %v4073_v31, %s3846_s2 }
 0x9e2   :  { %v796_v22 = vpop.xlane.xlu0 %795 }
 0x9e3   :  { %3743 = vrcp.f32 %v796_v22 }
 0x9e6   :  { %v793_v23 = vpop.xlane.xlu0 %792 }
 0x9e7   :  { %3745 = vrcp.f32 %v793_v23 }
 0x9ea   :  { %v3671_v24 = vpop.permute.xlu0 %3670 }
 0x9eb   :  { %v3673_v26 = vunpack.i.h.bf16 %v3671_v24  ;;  %v3672_v27 = vunpack.i.l.bf16 %v3671_v24 }
 0x9ed   :  { %v3452_v29 = vpack.c.bf16 %v3673_v26, %v3672_v27  ;;  %v3744_v32 = vpop.eup %3743 }
 0x9ee   :  { %v800_v36 = vmul.f32 %v3744_v32, %v3740_v30 }
 0x9ef   :  { %3454 = vmatprep.subr.msk.bf16.mxu1 %vm4085_vm4, %v3452_v29 }
 0x9f1   :  { %v3746_v33 = vpop.eup %3745 }
 0x9f2   :  { %v798_v34 = vmul.f32 %v3746_v33, %v3742_v20 }
 0x9f4   :  { %3167 = vmatprep.mubr.msk.f32.mxu1 %vm374_vm5, %v798_v34 }
 0x9f5   :  { %3168 = vmatmul.mubr.msk.f32.vlgmr.msra.gmra.mrb[8].mxu1 %vm374_vm5, %v800_v36 }
 0x9f6   :  { %3457 = vmatpush3.bf16.xpose.msk.msra.mxu1 %vm4085_vm4, %v3452_v29  ;;  %3174 = vmatprep.mubr.msk.f32.mxu1 %vm290_vm3, %v890_v38 }
 0x9fd   :  { %3175 = vmatmul.mubr.msk.f32.vlgmr.msra.gmra.mrb[10].mxu1 %vm290_vm3, %v892_v40 }
 0xac8   :  { %v3169_v41 = vpop.f32.mrb[8].mxu1 }
 0xac9   :  { %v880_v42 = vpop.f32.mrb[9].mxu1 }
 0xad0   :  { %v3176_v44 = vpop.f32.mrb[10].mxu1 }
 0xad1   :  { %v977_v45 = vadd.f32 %v3176_v44, %v4103_v39  ;;  %v971_v46 = vpop.f32.mrb[11].mxu1 }
 0xad2   :  { %v972_v47 = vadd.f32 %v971_v46, %v4098_v37 }
 0xad3   :  { %v983_v49 = vsel %vm378_vm6, %v977_v45, -inf }
 0xad4   :  { %984 = vmax.xlane.f32.xlu0 %v983_v49  ;;  %v980_v50 = vsel %vm374_vm5, %v972_v47, -inf }
 0xad5   :  { %981 = vmax.xlane.f32.xlu1 %v980_v50 }
 0xae6   :  { %3675 = vrot.lane.b32.xlu1 %v4073_v31, %s3847_s19 }
 0xaea   :  { %1094 = vrot.lane.b32.xlu1 %v4159_v58, %s3848_s20 }
 0xaee   :  { %1100 = vrot.lane.b32.xlu1 %v880_v42, %s4655_s21 }
 0xaf2   :  { %1102 = vrot.lane.b32.xlu1 %v3169_v41, %s4655_s21 }
 0xb61   :  { %v985_v51 = vpop.xlane.xlu0 %984 }
 0xb62   :  { %v987_v52 = vsub.f32 %v977_v45, %v985_v51  ;;  %v982_v53 = vpop.xlane.xlu1 %981 }
 0xb63   :  { %v986_v54 = vsub.f32 %v972_v47, %v982_v53 }
 0xb64   :  { %v990_v55 = vmul.f32 1.442695, %v987_v52 }
 0xb65   :  { %v988_v56 = vmul.f32 1.442695, %v986_v54 }
 0xb66   :  { %v3676_v57 = vpop.permute.xlu1 %3675 }
 0xb67   :  { %3747 = vpow2.f32 %v988_v56  ;;  %v3678_v60 = vunpack.i.h.bf16 %v3676_v57  ;;  %v3677_v61 = vunpack.i.l.bf16 %v3676_v57  ;;  %v1253_v57 = vld [vmem:[%s4648_s7] sm:$0xff] }
 0xb68   :  { %3749 = vpow2.f32 %v990_v55 }
 0xb69   :  { %v3458_v31 = vpack.c.bf16 %v3678_v60, %v3677_v61  ;;  %v1254_v60 = vld [vmem:[%s4648_s7 + $0x8] sm:$0xff] }
 0xb6a   :  { %v1095_v20 = vpop.permute.xlu1 %1094  ;;  %v3472_v61 = vpack.c.bf16 %v1254_v60, %v1253_v57 }
 0xb6b   :  { %3460 = vmatprep.subr.msk.bf16.mxu0 %vm4113_vm9, %v3458_v31  ;;  %v1115_v27 = vsel %vm290_vm3, %v4129_v15, %v1095_v20 }
 0xb6c   :  { %3463 = vmatpush3.bf16.msk.msra.mxu0 %vm4113_vm9, %v3458_v31  ;;  %v1255_v31 = vld [vmem:[%s4648_s7 + $0x10] sm:$0xff] }
 0xb6d   :  { %3473 = vmatprep.subr.bf16.mxu0 %v3472_v61 }
 0xb6e   :  { %v1101_v21 = vpop.permute.xlu1 %1100 }
 0xb71   :  { %v3748_v58 = vpop.eup %3747 }
 0xb72   :  { %v992_v62 = vsel %vm374_vm5, %v3748_v58, 0.0  ;;  %v3750_v63 = vpop.eup %3749  ;;  %v1103_v23 = vpop.permute.xlu1 %1102 }
 0xb73   :  { %993 = vadd.xlane.f32.xlu0 %v992_v62  ;;  %v995_v0 = vsel %vm378_vm6, %v3750_v63, 0.0  ;;  %v1118_v33 = vsel %vm1116_vm10, %v1115_v27, %v1103_v23  ;;  %v1363_v27 = vld [vmem:[%s4649_s8 + $0x18] sm:$0xff] }
 0xb77   :  { %996 = vadd.xlane.f32.xlu0 %v995_v0  ;;  %v1361_v0 = vld [vmem:[%s4649_s8 + $0x8] sm:$0xff] }
 0xb8d   :  { %1092 = vrot.lane.b32.xlu0 %v4161_v59, %s3848_s20  ;;  %v1123_v59 = vld [vmem:[%s4647_s6 + $0x8] sm:$0xff] }
 0xb8e   :  { %v3464_v17 = vpack.c.bf16 %v1123_v59, %v1122_v9  ;;  %v1243_v59 = vsub.s32 2, %v4042_v10 }
 0xb90   :  { %3465 = vmatprep.subr.bf16.mxu1 %v3464_v17 }
 0xb91   :  { %3467 = vmatpush3.bf16.msra.mxu1 %v3464_v17  ;;  %v1244_v17 = vrot.slane %v4050_v13, %v1243_v59 }
 0xb92   :  { %3469 = vmatprep.subr.bf16.mxu1 %v3468_v19 }
 0xb95   :  { %3471 = vmatpush3.bf16.msra.mxu1 %v3468_v19 }
 0xc00   :  { %v994_v2 = vpop.xlane.xlu0 %993 }
 0xc01   :  { %3751 = vrcp.f32 %v994_v2 }
 0xc04   :  { %v997_v4 = vpop.xlane.xlu0 %996 }
 0xc05   :  { %3753 = vrcp.f32 %v997_v4 }
 0xc08   :  { %v1093_v22 = vpop.permute.xlu0 %1092 }
 0xc09   :  { %v1114_v24 = vsel %vm290_vm3, %v4131_v16, %v1093_v22  ;;  %v1211_v16 = vsub.s32 4, %v4042_v10 }
 0xc0a   :  { %v1117_v29 = vsel %vm1116_vm10, %v1114_v24, %v1101_v21 }
 0xc0b   :  { %v3752_v5 = vpop.eup %3751  ;;  %v1212_v38 = vrot.slane %v4050_v13, %v1211_v16 }
 0xc0c   :  { %v999_v6 = vmul.f32 %v3752_v5, %v3748_v58  ;;  %v1256_v58 = vld [vmem:[%s4648_s7 + $0x18] sm:$0xff] }
 0xc0d   :  { %v3476_v62 = vpack.c.bf16 %v1256_v58, %v1255_v31 }
 0xc0e   :  { %3181 = vmatprep.mubr.msk.f32.mxu0 %vm374_vm5, %v999_v6 }
 0xc0f   :  { %v3754_v7 = vpop.eup %3753 }
 0xc10   :  { %v1001_v8 = vmul.f32 %v3754_v7, %v3750_v63  ;;  %v1360_v63 = vld [vmem:[%s4649_s8] sm:$0xff] }
 0xc11   :  { %v3480_v2 = vpack.c.bf16 %v1361_v0, %v1360_v63 }
 0xc12   :  { %3182 = vmatmul.mubr.msk.f32.vlgmr.msra.gmra.mrb[8].mxu0 %vm374_vm5, %v1001_v8 }
 0xc13   :  { %3475 = vmatpush3.bf16.msra.mxu0 %v3472_v61  ;;  %3481 = vmatprep.subr.bf16.mxu1 %v3480_v2 }
 0xc14   :  { %3477 = vmatprep.subr.bf16.mxu0 %v3476_v62 }
 0xc17   :  { %3479 = vmatpush3.bf16.msra.mxu0 %v3476_v62 }
 0xce5   :  { %v3183_v30 = vpop.f32.mrb[8].mxu0 }
 0xce6   :  { %1110 = vrot.lane.b32.xlu1 %v3183_v30, %s4653_s14  ;;  %v1081_v28 = vpop.f32.mrb[9].mxu0  ;;  %v1250_v30 = vrot.slane %v4050_v13, %v1249_v11 }
 0xce7   :  { %1108 = vrot.lane.b32.xlu0 %v1081_v28, %s4653_s14 }
 0xd58   :  { %v1111_v26 = vpop.permute.xlu1 %1110 }
 0xd59   :  { %v1109_v32 = vpop.permute.xlu0 %1108  ;;  %v1121_v36 = vsel %vm1119_vm11, %v1118_v33, %v1111_v26  ;;  %v1362_v26 = vld [vmem:[%s4649_s8 + $0x10] sm:$0xff]  ;;  %v1365_v33 = vld [vmem:[%s4649_s8 + $0x28] sm:$0xff] }
 0xd5a   :  { %v1120_v34 = vsel %vm1119_vm11, %v1117_v29, %v1109_v32  ;;  %v3484_v29 = vpack.c.bf16 %v1363_v27, %v1362_v26  ;;  %v1364_v32 = vld [vmem:[%s4649_s8 + $0x20] sm:$0xff] }
 0xd5b   :  { %3192 = vmatprep.mubr.msk.f32.mxu1 %vm154_vm1, %v1120_v34  ;;  %v3488_v34 = vpack.c.bf16 %v1365_v33, %v1364_v32 }
 0xd5c   :  { %3193 = vmatmul.mubr.msk.f32.vlgmr.msra.gmra.mrb[12].mxu1 %vm154_vm1, %v1121_v36  ;;  %v1366_v36 = vld [vmem:[%s4649_s8 + $0x30] sm:$0xff] }
 0xd5d   :  { %3483 = vmatpush3.bf16.msra.mxu1 %v3480_v2 }
 0xd5e   :  { %3485 = vmatprep.subr.bf16.mxu1 %v3484_v29 }
 0xd61   :  { %3487 = vmatpush3.bf16.msra.mxu1 %v3484_v29 }
 0xd62   :  { %3489 = vmatprep.subr.bf16.mxu1 %v3488_v34 }
 0xd65   :  { %3491 = vmatpush3.bf16.msra.mxu1 %v3488_v34 }
 0xe2f   :  { %v3194_v15 = vpop.f32.mrb[12].mxu1 }
 0xe30   :  { %v1208_v40 = vadd.f32 %v3194_v15, %v4022_v48  ;;  %v1198_v41 = vpop.f32.mrb[13].mxu1 }
 0xe31   :  { %v1207_v42 = vadd.f32 %v1198_v41, %v4015_v43  ;;  %v1369_v41 = vld [vmem:[%s4649_s8 + $0x48] sm:$0xff] }
 0xe32   :  { %v4239_v44 = vadd.f32 %v1212_v38, %v1208_v40  ;;  %v1368_v40 = vld [vmem:[%s4649_s8 + $0x40] sm:$0xff] }
 0xe33   :  { %v4241_v45 = vadd.f32 %v1212_v38, %v1207_v42  ;;  %v1367_v38 = vld [vmem:[%s4649_s8 + $0x38] sm:$0xff]  ;;  %v1370_v42 = vld [vmem:[%s4649_s8 + $0x50] sm:$0xff] }
 0xe34   :  { %v1218_v46 = vsel %vm158_vm2, %v4239_v44, 0.0  ;;  %v3492_v15 = vpack.c.bf16 %v1367_v38, %v1366_v36 }
 0xe35   :  { %1219 = vadd.xlane.f32.xlu1 %v1218_v46  ;;  %v1215_v47 = vsel %vm154_vm1, %v4241_v45, 0.0  ;;  %v3496_v46 = vpack.c.bf16 %v1369_v41, %v1368_v40 }
 0xe36   :  { %1216 = vadd.xlane.f32.xlu0 %v1215_v47  ;;  %3493 = vmatprep.subr.bf16.mxu1 %v3492_v15  ;;  %v1371_v47 = vld [vmem:[%s4649_s8 + $0x58] sm:$0xff] }
 0xe37   :  { %3495 = vmatpush3.bf16.msra.mxu1 %v3492_v15 }
 0xe38   :  { %3497 = vmatprep.subr.bf16.mxu1 %v3496_v46 }
 0xe3b   :  { %3499 = vmatpush3.bf16.msra.mxu1 %v3496_v46 }
 0xec2   :  { %v1220_v49 = vpop.xlane.xlu1 %1219 }
 0xec3   :  { %v1222_v50 = vmul.f32 0.03125, %v1220_v49  ;;  %v1217_v51 = vpop.xlane.xlu0 %1216  ;;  %v3500_v49 = vpack.c.bf16 %v1371_v47, %v1370_v42  ;;  %v2914_v47 = vld [vmem:[%s4646_s5 + $0x20] sm:$0xff] }
 0xec4   :  { %v1221_v52 = vmul.f32 0.03125, %v1217_v51  ;;  %v1373_v51 = vld [vmem:[%s4649_s8 + $0x68] sm:$0xff] }
 0xec5   :  { %v1224_v48 = vsub.f32 %v4239_v44, %v1222_v50  ;;  %v1372_v50 = vld [vmem:[%s4649_s8 + $0x60] sm:$0xff]  ;;  %3501 = vmatprep.subr.bf16.mxu1 %v3500_v49 }
 0xec6   :  { %v1223_v43 = vsub.f32 %v4241_v45, %v1221_v52  ;;  %v3504_v52 = vpack.c.bf16 %v1373_v51, %v1372_v50  ;;  %3503 = vmatpush3.bf16.msra.mxu1 %v3500_v49  ;;  %v2915_v49 = vld [vmem:[%s4646_s5 + $0x28] sm:$0xff]  ;;  %v2916_v51 = vld [vmem:[%s4646_s5 + $0x30] sm:$0xff] }
 0xec7   :  { %v1226_v55 = vmul.f32 %v1224_v48, %v1224_v48  ;;  %v3512_v50 = vpack.c.bf16 %v2915_v49, %v2914_v47 }
 0xec8   :  { %v1225_v53 = vmul.f32 %v1223_v43, %v1223_v43  ;;  %3505 = vmatprep.subr.bf16.mxu1 %v3504_v52 }
 0xec9   :  { %v1230_v56 = vsel %vm158_vm2, %v1226_v55, 0.0  ;;  %3513 = vmatprep.subr.bf16.mxu0 %v3512_v50 }
 0xeca   :  { %v1227_v54 = vsel %vm154_vm1, %v1225_v53, 0.0  ;;  %3507 = vmatpush3.bf16.msra.mxu1 %v3504_v52  ;;  %v2917_v52 = vld [vmem:[%s4646_s5 + $0x38] sm:$0xff] }
 0xecb   :  { %1228 = vadd.xlane.f32.xlu0 %v1227_v54  ;;  %v1259_v54 = vsub.s32 7, %v4042_v10 }
 0xecd   :  { %v1260_v55 = vrot.slane %v4050_v13, %v1259_v54 }
 0xecf   :  { %1231 = vadd.xlane.f32.xlu0 %v1230_v56 }
 0xf58   :  { %v1229_v4 = vpop.xlane.xlu0 %1228 }
 0xf59   :  { %v1233_v5 = vmul.f32 0.03125, %v1229_v4 }
 0xf5b   :  { %v1235_v6 = vadd.f32 1e-06, %v1233_v5 }
 0xf5c   :  { %v1232_v7 = vpop.xlane.xlu0 %1231 }
 0xf5d   :  { %3755 = vrsqrt.f32 %v1235_v6  ;;  %v1234_v8 = vmul.f32 0.03125, %v1232_v7 }
 0xf5f   :  { %v1236_v9 = vadd.f32 1e-06, %v1234_v8 }
 0xf61   :  { %3757 = vrsqrt.f32 %v1236_v9 }
 0xf67   :  { %v3756_v18 = vpop.eup %3755 }
 0xf68   :  { %v1239_v19 = vmul.f32 %v3756_v18, %v1223_v43  ;;  %v1375_v43 = vld [vmem:[%s4649_s8 + $0x78] sm:$0xff] }
 0xf6a   :  { %v1245_v28 = vmul.f32 %v1244_v17, %v1239_v19 }
 0xf6b   :  { %v3758_v20 = vpop.eup %3757 }
 0xf6c   :  { %v1240_v21 = vmul.f32 %v3758_v20, %v1224_v48  ;;  %v1251_v22 = vadd.f32 %v1250_v30, %v1245_v28  ;;  %v1374_v48 = vld [vmem:[%s4649_s8 + $0x70] sm:$0xff] }
 0xf6d   :  { %v3508_v53 = vpack.c.bf16 %v1375_v43, %v1374_v48  ;;  %v3516_v48 = vpack.c.bf16 %v2917_v52, %v2916_v51 }
 0xf6e   :  { %v1246_v23 = vmul.f32 %v1244_v17, %v1240_v21  ;;  %3203 = vmatprep.mubr.msk.f32.mxu0 %vm154_vm1, %v1251_v22  ;;  %v1455_v21 = vsub.s32 5, %v4042_v10 }
 0xf6f   :  { %3509 = vmatprep.subr.bf16.mxu1 %v3508_v53 }
 0xf70   :  { %v1252_v24 = vadd.f32 %v1250_v30, %v1246_v23  ;;  %3511 = vmatpush3.bf16.msra.mxu1 %v3508_v53  ;;  %v1456_v22 = vrot.slane %v4050_v13, %v1455_v21 }
 0xf72   :  { %3204 = vmatmul.mubr.msk.f32.vlgmr.msra.gmra.mrb[10].mxu0 %vm154_vm1, %v1252_v24 }
 0xf73   :  { %3515 = vmatpush3.bf16.msra.mxu0 %v3512_v50 }
 0xf74   :  { %3517 = vmatprep.subr.bf16.mxu0 %v3516_v48 }
 0xf77   :  { %3519 = vmatpush3.bf16.msra.mxu0 %v3516_v48 }
0x1045   :  { %v3205_v56 = vpop.f32.mrb[10].mxu0 }
0x1046   :  { %v1339_v57 = vadd.f32 %v3205_v56, %v1260_v55  ;;  %v1333_v60 = vpop.f32.mrb[11].mxu0 }
0x1047   :  { %v1334_v61 = vadd.f32 %v1333_v60, %v1260_v55 }
0x1048   :  { %v1345_v31 = vmul.f32 0.044715, %v1339_v57  ;;  %v1343_v30 = vmul.f32 0.5, %v1339_v57 }
0x1049   :  { %v1344_v58 = vmul.f32 0.044715, %v1334_v61  ;;  %v1342_v18 = vmul.f32 0.5, %v1334_v61 }
0x104a   :  { %v1347_v62 = vmul.f32 %v1345_v31, %v1339_v57 }
0x104b   :  { %v1346_v63 = vmul.f32 %v1344_v58, %v1334_v61 }
0x104c   :  { %v1349_v0 = vmul.f32 %v1347_v62, %v1339_v57 }
0x104d   :  { %v1348_v2 = vmul.f32 %v1346_v63, %v1334_v61 }
0x104e   :  { %v1351_v4 = vadd.f32 %v1349_v0, %v1339_v57 }
0x104f   :  { %v1350_v5 = vadd.f32 %v1348_v2, %v1334_v61  ;;  %v4358_v61 = vld [vmem:[%s4650_s9 + $0x8] sm:$0xff] }
0x1050   :  { %v1353_v6 = vmul.f32 0.7978846, %v1351_v4  ;;  %v1490_v31 = vrot.slane %v4358_v61, %v4045_v12  ;;  %v1496_v2 = vrot.slane %v4358_v61, %v4053_v14 }
0x1051   :  { %v1352_v7 = vmul.f32 0.7978846, %v1350_v5 }
0x1052   :  { %3759 = vtanh.f32 %v1353_v6 }
0x1053   :  { %3761 = vtanh.f32 %v1352_v7 }
0x105c   :  { %v3760_v8 = vpop.eup %3759 }
0x105d   :  { %v3762_v9 = vpop.eup %3761  ;;  %v1357_v17 = vadd.f32 1.0, %v3760_v8  ;;  %v1507_v8 = vrot.slane %v4358_v61, %v201_v25 }
0x105e   :  { %v1356_v19 = vadd.f32 1.0, %v3762_v9 }
0x105f   :  { %v1359_v20 = vmul.f32 %v1357_v17, %v1343_v30 }
0x1060   :  { %v1358_v28 = vmul.f32 %v1356_v19, %v1342_v18 }
0x1062   :  { %3238 = vmatprep.mubr.f32.mxu1 %v1358_v28 }
0x1063   :  { %3239 = vmatmul.mubr.f32.vlgmr.msra.gmra.mrb[14].mxu1 %v1359_v20 }
0x1136   :  { %v3240_v23 = vpop.f32.mrb[14].mxu1 }
0x1137   :  { %v1452_v24 = vadd.f32 %v3240_v23, %v4239_v44  ;;  %v1442_v26 = vpop.f32.mrb[15].mxu1 }
0x1138   :  { %v1451_v27 = vadd.f32 %v1442_v26, %v4241_v45 }
0x1139   :  { %v4331_v29 = vadd.f32 %v1456_v22, %v1452_v24 }
0x113a   :  { %v4333_v32 = vadd.f32 %v1456_v22, %v1451_v27 }
0x113b   :  { %v1464_v33 = vsel %vm158_vm2, %v4331_v29, 0.0 }
0x113c   :  { %1465 = vadd.xlane.f32.xlu1 %v1464_v33  ;;  %v1461_v34 = vsel %vm154_vm1, %v4333_v32, 0.0 }
0x113d   :  { %1462 = vadd.xlane.f32.xlu0 %v1461_v34 }
0x11c9   :  { %v1466_v36 = vpop.xlane.xlu1 %1465 }
0x11ca   :  { %v1468_v13 = vmul.f32 0.03125, %v1466_v36  ;;  %v1463_v38 = vpop.xlane.xlu0 %1462 }
0x11cb   :  { %v1467_v15 = vmul.f32 0.03125, %v1463_v38 }
0x11cc   :  { %v1470_v44 = vsub.f32 %v4331_v29, %v1468_v13 }
0x11cd   :  { %v1469_v45 = vsub.f32 %v4333_v32, %v1467_v15 }
0x11ce   :  { %v1472_v40 = vmul.f32 %v1470_v44, %v1470_v44 }
0x11cf   :  { %v1471_v41 = vmul.f32 %v1469_v45, %v1469_v45 }
0x11d0   :  { %v1476_v42 = vsel %vm158_vm2, %v1472_v40, 0.0 }
0x11d1   :  { %1477 = vadd.xlane.f32.xlu1 %v1476_v42  ;;  %v1473_v46 = vsel %vm154_vm1, %v1471_v41, 0.0 }
0x11d2   :  { %1474 = vadd.xlane.f32.xlu0 %v1473_v46 }
0x125e   :  { %v1478_v43 = vpop.xlane.xlu1 %1477 }
0x125f   :  { %v1480_v53 = vmul.f32 0.03125, %v1478_v43  ;;  %v1475_v55 = vpop.xlane.xlu0 %1474 }
0x1260   :  { %v1479_v56 = vmul.f32 0.03125, %v1475_v55 }
0x1261   :  { %v1482_v57 = vadd.f32 1e-06, %v1480_v53 }
0x1262   :  { %v1481_v60 = vadd.f32 1e-06, %v1479_v56 }
0x1263   :  { %3763 = vrsqrt.f32 %v1482_v57 }
0x1264   :  { %3765 = vrsqrt.f32 %v1481_v60 }
0x126d   :  { %v3764_v58 = vpop.eup %3763 }
0x126e   :  { %v3766_v62 = vpop.eup %3765  ;;  %v1486_v63 = vmul.f32 %v3764_v58, %v1470_v44 }
0x126f   :  { %v1485_v0 = vmul.f32 %v3766_v62, %v1469_v45 }
0x1270   :  { %v1492_v4 = vmul.f32 %v1490_v31, %v1486_v63 }
0x1271   :  { %v1491_v5 = vmul.f32 %v1490_v31, %v1485_v0 }
0x1272   :  { %v1498_v7 = vadd.f32 %v1496_v2, %v1492_v4 }
0x1273   :  { %v1497_v6 = vadd.f32 %v1496_v2, %v1491_v5 }
0x1275   :  { %3249 = vmatprep.mubr.msk.f32.mxu0 %vm154_vm1, %v1497_v6 }
0x1276   :  { %3250 = vmatmul.mubr.msk.f32.vlgmr.msra.gmra.mrb[12].mxu0 %vm154_vm1, %v1498_v7 }
0x1349   :  { %v3251_v9 = vpop.f32.mrb[12].mxu0 }
0x134a   :  { %v4369_v17 = vadd.f32 %v3251_v9, %v1507_v8  ;;  %v1580_v18 = vpop.f32.mrb[13].mxu0 }
0x134b   :  { %v4371_v19 = vadd.f32 %v1580_v18, %v1507_v8 }
0x134d   :  { %3256 = vmatprep.mubr.msk.f32.mxu0 %vm290_vm3, %v4371_v19  ;;  %v4377_v30 = vpack.i.bf16 %v4369_v17, %v4371_v19 }
0x134f   :  { %3680 = vrot.lane.b32.xlu0 %v4377_v30, %s3836_s27  ;;  %s3853_s27 = smov [#allocation2]  }
0x1353   :  { %3690 = vrot.lane.b32.xlu0 %v4377_v30, %s3837_s28  ;;  %s2869_s28 = sshll.u32 %s3853_s27, 4  ;;  %s2870_s28 = int_to_ptr.vmem [resolvable:$true] %s2869_s28 }
0x1354   :  { %p3816_p1 = scmp.lt.s32.totalorder %s2870_s28, %s2870_s28 }
0x1357   :  { %1788 = vrot.lane.b32.xlu0 %v4371_v19, %s3838_s29 }
0x135b   :  { %3695 = vrot.lane.b32.xlu0 %v4377_v30, %s3843_s17 }
0x135f   :  { %1989 = vrot.lane.b32.xlu0 %v4371_v19, %s3842_s16 }
0x13c1   :  { %v3681_v25 = vpop.permute.xlu0 %3680 }
0x13c2   :  { %v3683_v28 = vunpack.i.h.bf16 %v3681_v25  ;;  %v3682_v20 = vunpack.i.l.bf16 %v3681_v25  ;;  %v4432_v25 = vld [vmem:[%s4644_s3 + $0x8] sm:$0x3] }
0x13c4   :  { %v3520_v22 = vpack.c.bf16 %v3683_v28, %v3682_v20 }
0x13c5   :  { %v3691_v23 = vpop.permute.xlu0 %3690 }
0x13c6   :  { %3522 = vmatprep.subr.msk.bf16.mxu0 %vm4085_vm4, %v3520_v22  ;;  %v3693_v51 = vunpack.i.h.bf16 %v3691_v23 }
0x13c7   :  { %3525 = vmatpush3.bf16.xpose.msk.msra.mxu0 %vm4085_vm4, %v3520_v22  ;;  %v4438_v22 = vld [vmem:[%s4644_s3] sm:$0xff]  ;;  %s4661_s3 = smov 16  }
0x13c9   :  { %v1789_v24 = vpop.permute.xlu0 %1788 }
0x13cd   :  { %v3696_v26 = vpop.permute.xlu0 %3695 }
0x13ce   :  { %v3698_v27 = vunpack.i.h.bf16 %v3696_v26  ;;  %v3697_v33 = vunpack.i.l.bf16 %v3696_v26  ;;  %3257 = vmatmul.mubr.msk.f32.vlgmr.msra.gmra.mrb[14].mxu0 %vm290_vm3, %v4369_v17 }
0x13d0   :  { %v3544_v34 = vpack.c.bf16 %v3698_v27, %v3697_v33 }
0x13d1   :  { %v1990_v36 = vpop.permute.xlu0 %1989 }
0x13d2   :  { %3546 = vmatprep.subr.msk.bf16.mxu1 %vm4085_vm4, %v3544_v34  ;;  %3284 = vmatprep.mubr.msk.f32.mxu1 %vm290_vm3, %v1990_v36 }
0x13d3   :  { %3549 = vmatpush3.bf16.xpose.msk.msra.mxu1 %vm4085_vm4, %v3544_v34 }
0x14a1   :  { %v3258_v13 = vpop.f32.mrb[14].mxu0 }
0x14a2   :  { %v1669_v38 = vpop.f32.mrb[15].mxu0  ;;  %v1675_v44 = vadd.f32 %v3258_v13, %v4103_v39 }
0x14a3   :  { %v1670_v15 = vadd.f32 %v1669_v38, %v4098_v37  ;;  %v3692_v37 = vunpack.i.l.bf16 %v3691_v23 }
0x14a4   :  { %v1681_v40 = vsel %vm378_vm6, %v1675_v44, -inf }
0x14a5   :  { %v1678_v45 = vsel %vm374_vm5, %v1670_v15, -inf  ;;  %v3532_v53 = vpack.c.bf16 %v3693_v51, %v3692_v37 }
0x14a6   :  { %1679 = vmax.xlane.f32.xlu1 %v1678_v45 }
0x14aa   :  { %1682 = vmax.xlane.f32.xlu1 %v1681_v40 }
0x14bb   :  { %3685 = vrot.lane.b32.xlu1 %v4377_v30, %s3839_s15 }
0x1533   :  { %v1680_v41 = vpop.xlane.xlu1 %1679 }
0x1534   :  { %v1684_v42 = vsub.f32 %v1670_v15, %v1680_v41 }
0x1536   :  { %v1686_v49 = vmul.f32 1.442695, %v1684_v42 }
0x1537   :  { %v1683_v46 = vpop.xlane.xlu1 %1682 }
0x1538   :  { %v1685_v47 = vsub.f32 %v1675_v44, %v1683_v46 }
0x153a   :  { %v1688_v50 = vmul.f32 1.442695, %v1685_v47 }
0x153b   :  { %v3686_v52 = vpop.permute.xlu1 %3685 }
0x153c   :  { %3767 = vpow2.f32 %v1688_v50  ;;  %v3688_v39 = vunpack.i.h.bf16 %v3686_v52  ;;  %v3687_v48 = vunpack.i.l.bf16 %v3686_v52 }
0x153d   :  { %3769 = vpow2.f32 %v1686_v49 }
0x153e   :  { %v3526_v43 = vpack.c.bf16 %v3688_v39, %v3687_v48 }
0x1540   :  { %3528 = vmatprep.subr.msk.bf16.mxu0 %vm4113_vm9, %v3526_v43 }
0x1541   :  { %3531 = vmatpush3.bf16.msk.msra.mxu0 %vm4113_vm9, %v3526_v43 }
0x1542   :  { %3534 = vmatprep.subr.msk.bf16.mxu0 %vm4085_vm4, %v3532_v53 }
0x1546   :  { %v3768_v55 = vpop.eup %3767 }
0x1547   :  { %v1693_v56 = vsel %vm378_vm6, %v3768_v55, 0.0  ;;  %v3770_v57 = vpop.eup %3769 }
0x1548   :  { %1694 = vadd.xlane.f32.xlu1 %v1693_v56  ;;  %v1690_v60 = vsel %vm374_vm5, %v3770_v57, 0.0 }
0x154c   :  { %1691 = vadd.xlane.f32.xlu1 %v1690_v60 }
0x155d   :  { %1790 = vrot.lane.b32.xlu1 %v4369_v17, %s3838_s29 }
0x1561   :  { %1991 = vrot.lane.b32.xlu1 %v4369_v17, %s3842_s16 }
0x15d5   :  { %v1695_v31 = vpop.xlane.xlu1 %1694 }
0x15d6   :  { %3771 = vrcp.f32 %v1695_v31 }
0x15d9   :  { %v1692_v58 = vpop.xlane.xlu1 %1691 }
0x15da   :  { %3773 = vrcp.f32 %v1692_v58 }
0x15dd   :  { %v1791_v62 = vpop.permute.xlu1 %1790 }
0x15e0   :  { %v3772_v0 = vpop.eup %3771 }
0x15e1   :  { %v1992_v63 = vpop.permute.xlu1 %1991  ;;  %v1699_v5 = vmul.f32 %v3772_v0, %v3768_v55 }
0x15e2   :  { %3285 = vmatmul.mubr.msk.f32.vlgmr.msra.gmra.mrb[16].mxu1 %vm290_vm3, %v1992_v63 }
0x15e4   :  { %v3774_v2 = vpop.eup %3773 }
0x15e5   :  { %v1697_v4 = vmul.f32 %v3774_v2, %v3770_v57 }
0x15e7   :  { %3263 = vmatprep.mubr.msk.f32.mxu0 %vm374_vm5, %v1697_v4 }
0x15e8   :  { %3264 = vmatmul.mubr.msk.f32.vlgmr.msra.gmra.mrb[16].mxu0 %vm374_vm5, %v1699_v5 }
0x15e9   :  { %3537 = vmatpush3.bf16.xpose.msk.msra.mxu0 %vm4085_vm4, %v3532_v53  ;;  %3270 = vmatprep.mubr.msk.f32.mxu0 %vm290_vm3, %v1789_v24 }
0x15f0   :  { %3271 = vmatmul.mubr.msk.f32.vlgmr.msra.gmra.mrb[18].mxu0 %vm290_vm3, %v1791_v62 }
0x16b5   :  { %v3286_v6 = vpop.f32.mrb[16].mxu1 }
0x16b6   :  { %v2071_v7 = vpop.f32.mrb[17].mxu1  ;;  %v2077_v33 = vadd.f32 %v4432_v25, %v3286_v6 }
0x16b7   :  { %v2072_v26 = vadd.f32 %v4438_v22, %v2071_v7 }
0x16b8   :  { %v2083_v36 = vsel %vm378_vm6, %v2077_v33, -inf }
0x16b9   :  { %v2080_v34 = vsel %vm374_vm5, %v2072_v26, -inf }
0x16bb   :  { %v4425_v8 = vpop.f32.mrb[16].mxu0 }
0x16bc   :  { %v4427_v9 = vpop.f32.mrb[17].mxu0 }
0x16c3   :  { %v3272_v18 = vpop.f32.mrb[18].mxu0 }
0x16c4   :  { %v1876_v28 = vadd.f32 %v4432_v25, %v3272_v18  ;;  %v1870_v20 = vpop.f32.mrb[19].mxu0 }
0x16c5   :  { %v1871_v23 = vadd.f32 %v4438_v22, %v1870_v20 }
0x16c6   :  { %v1882_v24 = vsel %vm378_vm6, %v1876_v28, -inf }
0x16c7   :  { %1883 = vmax.xlane.f32.xlu1 %v1882_v24  ;;  %v1879_v27 = vsel %vm374_vm5, %v1871_v23, -inf }
0x16c8   :  { %1880 = vmax.xlane.f32.xlu0 %v1879_v27 }
0x16cc   :  { %2081 = vmax.xlane.f32.xlu0 %v2080_v34 }
0x16d0   :  { %2084 = vmax.xlane.f32.xlu0 %v2083_v36 }
0x1754   :  { %v1884_v15 = vpop.xlane.xlu1 %1883 }
0x1755   :  { %v1881_v13 = vpop.xlane.xlu0 %1880  ;;  %v1886_v40 = vsub.f32 %v1876_v28, %v1884_v15 }
0x1756   :  { %v1885_v38 = vsub.f32 %v1871_v23, %v1881_v13 }
0x1757   :  { %v1889_v49 = vmul.f32 1.442695, %v1886_v40 }
0x1758   :  { %v1887_v41 = vmul.f32 1.442695, %v1885_v38 }
0x1759   :  { %v2082_v44 = vpop.xlane.xlu0 %2081 }
0x175a   :  { %v2086_v45 = vsub.f32 %v2072_v26, %v2082_v44 }
0x175c   :  { %v2088_v42 = vmul.f32 1.442695, %v2086_v45 }
0x175d   :  { %v2085_v46 = vpop.xlane.xlu0 %2084 }
0x175e   :  { %3775 = vpow2.f32 %v2088_v42  ;;  %v2087_v47 = vsub.f32 %v2077_v33, %v2085_v46 }
0x175f   :  { %3777 = vpow2.f32 %v1887_v41 }
0x1760   :  { %v2090_v50 = vmul.f32 1.442695, %v2087_v47 }
0x1762   :  { %3779 = vpow2.f32 %v2090_v50 }
0x1763   :  { %3781 = vpow2.f32 %v1889_v49 }
0x1768   :  { %v3776_v51 = vpop.eup %3775 }
0x1769   :  { %v2092_v52 = vsel %vm374_vm5, %v3776_v51, 0.0  ;;  %v3778_v37 = vpop.eup %3777 }
0x176a   :  { %2093 = vadd.xlane.f32.xlu0 %v2092_v52  ;;  %v1891_v48 = vsel %vm374_vm5, %v3778_v37, 0.0 }
0x176c   :  { %v3780_v39 = vpop.eup %3779 }
0x176d   :  { %v2095_v43 = vsel %vm378_vm6, %v3780_v39, 0.0  ;;  %v3782_v53 = vpop.eup %3781 }
0x176e   :  { %1892 = vadd.xlane.f32.xlu0 %v1891_v48  ;;  %2096 = vadd.xlane.f32.xlu1 %v2095_v43  ;;  %v1894_v55 = vsel %vm378_vm6, %v3782_v53, 0.0 }
0x1772   :  { %1895 = vadd.xlane.f32.xlu1 %v1894_v55 }
0x1783   :  { %3705 = vrot.lane.b32.xlu1 %v4377_v30, %s3844_s18 }
0x1784   :  { %3700 = vrot.lane.b32.xlu0 %v4377_v30, %s3841_s1 }
0x1787   :  { %3710 = vrot.lane.b32.xlu1 %v4377_v30, %s3846_s2 }
0x1788   :  { %2192 = vrot.lane.b32.xlu0 %v4369_v17, %s3845_s0 }
0x178b   :  { %2190 = vrot.lane.b32.xlu1 %v4371_v19, %s3845_s0 }
0x17f7   :  { %v2094_v56 = vpop.xlane.xlu0 %2093 }
0x17fb   :  { %v2097_v57 = vpop.xlane.xlu1 %2096  ;;  %v1893_v60 = vpop.xlane.xlu0 %1892 }
0x17fc   :  { %3783 = vrcp.f32 %v1893_v60 }
0x17fd   :  { %3785 = vrcp.f32 %v2094_v56 }
0x17ff   :  { %v1896_v31 = vpop.xlane.xlu1 %1895  ;;  %v3701_v58 = vpop.permute.xlu0 %3700 }
0x1800   :  { %3787 = vrcp.f32 %v1896_v31  ;;  %v3703_v62 = vunpack.i.h.bf16 %v3701_v58  ;;  %v3702_v63 = vunpack.i.l.bf16 %v3701_v58 }
0x1801   :  { %3789 = vrcp.f32 %v2097_v57 }
0x1802   :  { %v3538_v0 = vpack.c.bf16 %v3703_v62, %v3702_v63 }
0x1803   :  { %v3706_v2 = vpop.permute.xlu1 %3705  ;;  %v2193_v13 = vpop.permute.xlu0 %2192 }
0x1804   :  { %v3708_v4 = vunpack.i.h.bf16 %v3706_v2  ;;  %v3707_v5 = vunpack.i.l.bf16 %v3706_v2  ;;  %3540 = vmatprep.subr.msk.bf16.mxu0 %vm4113_vm9, %v3538_v0  ;;  %v2949_v2 = vld [vmem:[%s4647_s6 + $0x28] sm:$0xff] }
0x1805   :  { %3543 = vmatpush3.bf16.msk.msra.mxu0 %vm4113_vm9, %v3538_v0  ;;  %v2948_v0 = vld [vmem:[%s4647_s6 + $0x20] sm:$0xff] }
0x1806   :  { %v3550_v17 = vpack.c.bf16 %v3708_v4, %v3707_v5  ;;  %v3784_v19 = vpop.eup %3783  ;;  %v2950_v4 = vld [vmem:[%s4647_s6 + $0x30] sm:$0xff]  ;;  %v3568_v5 = vpack.c.bf16 %v2949_v2, %v2948_v0 }
0x1807   :  { %v3711_v6 = vpop.permute.xlu1 %3710  ;;  %v1898_v7 = vmul.f32 %v3784_v19, %v3778_v37  ;;  %v3786_v18 = vpop.eup %3785 }
0x1808   :  { %3552 = vmatprep.subr.msk.bf16.mxu0 %vm4113_vm9, %v3550_v17  ;;  %v3713_v28 = vunpack.i.h.bf16 %v3711_v6  ;;  %v3712_v20 = vunpack.i.l.bf16 %v3711_v6  ;;  %v2099_v27 = vmul.f32 %v3786_v18, %v3776_v51 }
0x1809   :  { %3277 = vmatprep.mubr.msk.f32.mxu0 %vm374_vm5, %v1898_v7 }
0x180a   :  { %v3788_v23 = vpop.eup %3787  ;;  %v3556_v33 = vpack.c.bf16 %v3713_v28, %v3712_v20 }
0x180b   :  { %v1900_v24 = vmul.f32 %v3788_v23, %v3782_v53  ;;  %v3790_v26 = vpop.eup %3789  ;;  %v2191_v36 = vpop.permute.xlu1 %2190 }
0x180c   :  { %v2101_v34 = vmul.f32 %v3790_v26, %v3780_v39 }
0x180d   :  { %3278 = vmatmul.mubr.msk.f32.vlgmr.msra.gmra.mrb[20].mxu0 %vm374_vm5, %v1900_v24 }
0x180e   :  { %3555 = vmatpush3.bf16.msk.msra.mxu0 %vm4113_vm9, %v3550_v17  ;;  %3291 = vmatprep.mubr.msk.f32.mxu0 %vm374_vm5, %v2099_v27  ;;  %v2951_v17 = vld [vmem:[%s4647_s6 + $0x38] sm:$0xff] }
0x180f   :  { %3558 = vmatprep.subr.msk.bf16.mxu0 %vm4085_vm4, %v3556_v33  ;;  %v3572_v19 = vpack.c.bf16 %v2951_v17, %v2950_v4  ;;  %v2550_v4 = vrot.slane %v4358_v61, %v1249_v11  ;;  %v2964_v11 = vld [vmem:[%s4649_s8 + $0xa0] sm:$0xff] }
0x1811   :  { %3292 = vmatmul.mubr.msk.f32.vlgmr.msra.gmra.mrb[22].mxu0 %vm374_vm5, %v2101_v34 }
0x1812   :  { %3298 = vmatprep.mubr.msk.f32.mxu0 %vm290_vm3, %v2191_v36 }
0x1817   :  { %3561 = vmatpush3.bf16.xpose.msk.msra.mxu0 %vm4085_vm4, %v3556_v33 }
0x181e   :  { %3299 = vmatmul.mubr.msk.f32.vlgmr.msra.gmra.mrb[24].mxu0 %vm290_vm3, %v2193_v13 }
0x18e0   :  { %v3279_v38 = vpop.f32.mrb[20].mxu0 }
0x18e1   :  { %v1980_v15 = vpop.f32.mrb[21].mxu0 }
0x18e4   :  { %v3293_v44 = vpop.f32.mrb[22].mxu0 }
0x18e5   :  { %v2181_v45 = vpop.f32.mrb[23].mxu0 }
0x18f1   :  { %v3300_v40 = vpop.f32.mrb[24].mxu0 }
0x18f2   :  { %v2278_v41 = vadd.f32 %v4432_v25, %v3300_v40  ;;  %v2272_v42 = vpop.f32.mrb[25].mxu0 }
0x18f3   :  { %v2273_v46 = vadd.f32 %v4438_v22, %v2272_v42 }
0x18f4   :  { %v2284_v47 = vsel %vm378_vm6, %v2278_v41, -inf }
0x18f5   :  { %2285 = vmax.xlane.f32.xlu0 %v2284_v47  ;;  %v2281_v49 = vsel %vm374_vm5, %v2273_v46, -inf }
0x18f6   :  { %2282 = vmax.xlane.f32.xlu1 %v2281_v49 }
0x1907   :  { %3715 = vrot.lane.b32.xlu1 %v4377_v30, %s3847_s19  ;;  %s4662_s19 = smov 24  }
0x190b   :  { %2395 = vrot.lane.b32.xlu1 %v3279_v38, %s3848_s20 }
0x190f   :  { %2401 = vrot.lane.b32.xlu1 %v2181_v45, %s4661_s3 }
0x1913   :  { %2403 = vrot.lane.b32.xlu1 %v3293_v44, %s4661_s3  ;;  %s3811_s3 = scalar_lea.vmem %s2870_s28, 32 }
0x1914   :  { %p3812_p0 = scmp.ne.s32.totalorder %s2870_s28, %s3811_s3  ;;  %p3817_p2 = scmp.lt.s32.totalorder %s3811_s3, %s3811_s3 }
0x1916   :  { %p3818_p3 = por %p3817_p2, %p3816_p1 }
0x1918   :  { %p3819_p4 = pnand %p3818_p3, %p3812_p0 }
0x1982   :  { %v2286_v35 = vpop.xlane.xlu0 %2285 }
0x1983   :  { %v2288_v25 = vsub.f32 %v2278_v41, %v2286_v35  ;;  %v2283_v50 = vpop.xlane.xlu1 %2282 }
0x1984   :  { %v2287_v51 = vsub.f32 %v2273_v46, %v2283_v50 }
0x1985   :  { %v2291_v22 = vmul.f32 1.442695, %v2288_v25 }
0x1986   :  { %v2289_v52 = vmul.f32 1.442695, %v2287_v51 }
0x1987   :  { %v3716_v37 = vpop.permute.xlu1 %3715 }
0x1988   :  { %3791 = vpow2.f32 %v2289_v52  ;;  %v3718_v39 = vunpack.i.h.bf16 %v3716_v37  ;;  %v3717_v48 = vunpack.i.l.bf16 %v3716_v37  ;;  %v2954_v52 = vld [vmem:[%s4648_s7 + $0x20] sm:$0xff]  ;;  %v2955_v37 = vld [vmem:[%s4648_s7 + $0x28] sm:$0xff] }
0x1989   :  { %3793 = vpow2.f32 %v2291_v22 }
0x198a   :  { %v3562_v43 = vpack.c.bf16 %v3718_v39, %v3717_v48  ;;  %v3576_v39 = vpack.c.bf16 %v2955_v37, %v2954_v52  ;;  %v2956_v48 = vld [vmem:[%s4648_s7 + $0x30] sm:$0xff] }
0x198b   :  { %v2396_v18 = vpop.permute.xlu1 %2395 }
0x198c   :  { %3564 = vmatprep.subr.msk.bf16.mxu1 %vm4113_vm9, %v3562_v43  ;;  %v2416_v27 = vsel %vm290_vm3, %v4425_v8, %v2396_v18  ;;  %3577 = vmatprep.subr.bf16.mxu0 %v3576_v39 }
0x198d   :  { %3567 = vmatpush3.bf16.msk.msra.mxu1 %vm4113_vm9, %v3562_v43  ;;  %3579 = vmatpush3.bf16.msra.mxu0 %v3576_v39  ;;  %v2957_v43 = vld [vmem:[%s4648_s7 + $0x38] sm:$0xff] }
0x198e   :  { %3569 = vmatprep.subr.bf16.mxu1 %v3568_v5 }
0x198f   :  { %v2402_v28 = vpop.permute.xlu1 %2401 }
0x1992   :  { %v3792_v30 = vpop.eup %3791 }
0x1993   :  { %v2293_v53 = vsel %vm374_vm5, %v3792_v30, 0.0  ;;  %v3794_v55 = vpop.eup %3793  ;;  %v2404_v23 = vpop.permute.xlu1 %2403 }
0x1994   :  { %2294 = vadd.xlane.f32.xlu0 %v2293_v53  ;;  %v2296_v56 = vsel %vm378_vm6, %v3794_v55, 0.0  ;;  %v2418_v36 = vsel %vm1116_vm10, %v2416_v27, %v2404_v23  ;;  %v2960_v53 = vld [vmem:[%s4649_s8 + $0x80] sm:$0xff]  ;;  %v2965_v23 = vld [vmem:[%s4649_s8 + $0xa8] sm:$0xff]  ;;  %v2967_v27 = vld [vmem:[%s4649_s8 + $0xb8] sm:$0xff] }
0x1998   :  { %2297 = vadd.xlane.f32.xlu0 %v2296_v56 }
0x19ae   :  { %2393 = vrot.lane.b32.xlu0 %v1980_v15, %s3848_s20 }
0x1a21   :  { %v2295_v57 = vpop.xlane.xlu0 %2294 }
0x1a22   :  { %3795 = vrcp.f32 %v2295_v57 }
0x1a25   :  { %v2298_v60 = vpop.xlane.xlu0 %2297 }
0x1a26   :  { %3797 = vrcp.f32 %v2298_v60 }
0x1a29   :  { %v2394_v20 = vpop.permute.xlu0 %2393 }
0x1a2a   :  { %v2415_v24 = vsel %vm290_vm3, %v4427_v9, %v2394_v20  ;;  %v2512_v9 = vrot.slane %v4358_v61, %v1211_v16 }
0x1a2b   :  { %v2417_v33 = vsel %vm1116_vm10, %v2415_v24, %v2402_v28  ;;  %v2963_v28 = vld [vmem:[%s4649_s8 + $0x98] sm:$0xff]  ;;  %v3592_v24 = vpack.c.bf16 %v2965_v23, %v2964_v11  ;;  %v2838_v11 = vld [vmem:[%s4651_s10] sm:$0x3] }
0x1a2c   :  { %v3796_v31 = vpop.eup %3795  ;;  %v2855_v23 = vrot.slane %v2838_v11, %v4045_v12 }
0x1a2d   :  { %v2300_v58 = vmul.f32 %v3796_v31, %v3792_v30  ;;  %v3580_v30 = vpack.c.bf16 %v2957_v43, %v2956_v48 }
0x1a2f   :  { %3305 = vmatprep.mubr.msk.f32.mxu1 %vm374_vm5, %v2300_v58  ;;  %3581 = vmatprep.subr.bf16.mxu0 %v3580_v30 }
0x1a30   :  { %v3798_v62 = vpop.eup %3797  ;;  %3583 = vmatpush3.bf16.msra.mxu0 %v3580_v30 }
0x1a31   :  { %v2302_v63 = vmul.f32 %v3798_v62, %v3794_v55  ;;  %3616 = vmatprep.subr.bf16.mxu0 %v3835_v3  ;;  %v2961_v55 = vld [vmem:[%s4649_s8 + $0x88] sm:$0xff]  ;;  %v2544_v3 = vrot.slane %v4358_v61, %v1243_v59  ;;  %v2962_v59 = vld [vmem:[%s4649_s8 + $0x90] sm:$0xff] }
0x1a32   :  { %v3584_v56 = vpack.c.bf16 %v2961_v55, %v2960_v53  ;;  %v3588_v20 = vpack.c.bf16 %v2963_v28, %v2962_v59 }
0x1a33   :  { %3306 = vmatmul.mubr.msk.f32.vlgmr.msra.gmra.mrb[18].mxu1 %vm374_vm5, %v2302_v63 }
0x1a34   :  { %3571 = vmatpush3.bf16.msra.mxu1 %v3568_v5 }
0x1a35   :  { %3573 = vmatprep.subr.bf16.mxu1 %v3572_v19 }
0x1a38   :  { %3575 = vmatpush3.bf16.msra.mxu1 %v3572_v19 }
0x1a39   :  { %3585 = vmatprep.subr.bf16.mxu1 %v3584_v56 }
0x1b06   :  { %v3307_v6 = vpop.f32.mrb[18].mxu1 }
0x1b07   :  { %2411 = vrot.lane.b32.xlu1 %v3307_v6, %s4662_s19  ;;  %v2382_v7 = vpop.f32.mrb[19].mxu1 }
0x1b08   :  { %2409 = vrot.lane.b32.xlu0 %v2382_v7, %s4662_s19 }
0x1b79   :  { %v2412_v26 = vpop.permute.xlu1 %2411 }
0x1b7a   :  { %v2410_v34 = vpop.permute.xlu0 %2409  ;;  %v2420_v38 = vsel %vm1119_vm11, %v2418_v36, %v2412_v26  ;;  %v2966_v26 = vld [vmem:[%s4649_s8 + $0xb0] sm:$0xff]  ;;  %v2969_v36 = vld [vmem:[%s4649_s8 + $0xc8] sm:$0xff] }
0x1b7b   :  { %v2419_v13 = vsel %vm1119_vm11, %v2417_v33, %v2410_v34  ;;  %v3596_v33 = vpack.c.bf16 %v2967_v27, %v2966_v26  ;;  %v2968_v34 = vld [vmem:[%s4649_s8 + $0xc0] sm:$0xff]  ;;  %v2860_v27 = vrot.slane %v2838_v11, %v4053_v14 }
0x1b7c   :  { %3316 = vmatprep.mubr.msk.f32.mxu1 %vm154_vm1, %v2419_v13  ;;  %v2970_v13 = vld [vmem:[%s4649_s8 + $0xd0] sm:$0xff] }
0x1b7d   :  { %3317 = vmatmul.mubr.msk.f32.vlgmr.msra.gmra.mrb[20].mxu1 %vm154_vm1, %v2420_v38  ;;  %v3600_v38 = vpack.c.bf16 %v2969_v36, %v2968_v34 }
0x1b7e   :  { %3587 = vmatpush3.bf16.msra.mxu1 %v3584_v56 }
0x1b7f   :  { %3589 = vmatprep.subr.bf16.mxu1 %v3588_v20 }
0x1b82   :  { %3591 = vmatpush3.bf16.msra.mxu1 %v3588_v20 }
0x1b83   :  { %3593 = vmatprep.subr.bf16.mxu1 %v3592_v24 }
0x1b86   :  { %3595 = vmatpush3.bf16.msra.mxu1 %v3592_v24 }
0x1b87   :  { %3597 = vmatprep.subr.bf16.mxu1 %v3596_v33 }
0x1b8a   :  { %3599 = vmatpush3.bf16.msra.mxu1 %v3596_v33 }
0x1b8b   :  { %3601 = vmatprep.subr.bf16.mxu1 %v3600_v38 }
0x1b8e   :  { %3603 = vmatpush3.bf16.msra.mxu1 %v3600_v38 }
0x1c50   :  { %v3318_v15 = vpop.f32.mrb[20].mxu1 }
0x1c51   :  { %v2508_v8 = vadd.f32 %v3318_v15, %v4331_v29  ;;  %v2498_v44 = vpop.f32.mrb[21].mxu1 }
0x1c52   :  { %v2507_v45 = vadd.f32 %v2498_v44, %v4333_v32  ;;  %v2973_v44 = vld [vmem:[%s4649_s8 + $0xe8] sm:$0xff] }
0x1c53   :  { %v4526_v40 = vadd.f32 %v2512_v9, %v2508_v8  ;;  %v2972_v8 = vld [vmem:[%s4649_s8 + $0xe0] sm:$0xff] }
0x1c54   :  { %v4528_v41 = vadd.f32 %v2512_v9, %v2507_v45  ;;  %v2971_v9 = vld [vmem:[%s4649_s8 + $0xd8] sm:$0xff]  ;;  %v3608_v45 = vpack.c.bf16 %v2973_v44, %v2972_v8 }
0x1c55   :  { %v2518_v42 = vsel %vm158_vm2, %v4526_v40, 0.0  ;;  %v3604_v15 = vpack.c.bf16 %v2971_v9, %v2970_v13 }
0x1c56   :  { %2519 = vadd.xlane.f32.xlu1 %v2518_v42  ;;  %v2515_v46 = vsel %vm154_vm1, %v4528_v41, 0.0  ;;  %v2974_v42 = vld [vmem:[%s4649_s8 + $0xf0] sm:$0xff] }
0x1c57   :  { %2516 = vadd.xlane.f32.xlu0 %v2515_v46  ;;  %3605 = vmatprep.subr.bf16.mxu1 %v3604_v15  ;;  %v2975_v46 = vld [vmem:[%s4649_s8 + $0xf8] sm:$0xff] }
0x1c58   :  { %3607 = vmatpush3.bf16.msra.mxu1 %v3604_v15 }
0x1c59   :  { %3609 = vmatprep.subr.bf16.mxu1 %v3608_v45 }
0x1c5c   :  { %3611 = vmatpush3.bf16.msra.mxu1 %v3608_v45 }
0x1ce3   :  { %v2520_v47 = vpop.xlane.xlu1 %2519 }
0x1ce4   :  { %v2522_v16 = vmul.f32 0.03125, %v2520_v47  ;;  %v2517_v49 = vpop.xlane.xlu0 %2516  ;;  %v3612_v47 = vpack.c.bf16 %v2975_v46, %v2974_v42 }
0x1ce5   :  { %v2521_v35 = vmul.f32 0.03125, %v2517_v49 }
0x1ce6   :  { %v2524_v29 = vsub.f32 %v4526_v40, %v2522_v16  ;;  %3613 = vmatprep.subr.bf16.mxu1 %v3612_v47  ;;  %v2561_v16 = vrot.slane %v4358_v61, %v1259_v54 }
0x1ce7   :  { %v2523_v32 = vsub.f32 %v4528_v41, %v2521_v35  ;;  %3615 = vmatpush3.bf16.msra.mxu1 %v3612_v47 }
0x1ce8   :  { %v2526_v51 = vmul.f32 %v2524_v29, %v2524_v29 }
0x1ce9   :  { %v2525_v25 = vmul.f32 %v2523_v32, %v2523_v32 }
0x1cea   :  { %v2530_v22 = vsel %vm158_vm2, %v2526_v51, 0.0 }
0x1ceb   :  { %v2527_v50 = vsel %vm154_vm1, %v2525_v25, 0.0 }
0x1cec   :  { %2528 = vadd.xlane.f32.xlu0 %v2527_v50 }
0x1cf0   :  { %2531 = vadd.xlane.f32.xlu0 %v2530_v22 }
0x1d79   :  { %v2529_v57 = vpop.xlane.xlu0 %2528 }
0x1d7a   :  { %v2533_v60 = vmul.f32 0.03125, %v2529_v57 }
0x1d7c   :  { %v2535_v31 = vadd.f32 1e-06, %v2533_v60 }
0x1d7d   :  { %v2532_v58 = vpop.xlane.xlu0 %2531 }
0x1d7e   :  { %3799 = vrsqrt.f32 %v2535_v31  ;;  %v2534_v62 = vmul.f32 0.03125, %v2532_v58 }
0x1d80   :  { %v2536_v63 = vadd.f32 1e-06, %v2534_v62  ;;  %v3852_v62 = vmov 0.0  }
0x1d82   :  { %3801 = vrsqrt.f32 %v2536_v63  ;;  %v2758_v63 = vrot.slane %v4358_v61, %v1455_v21 }
0x1d88   :  { %v3800_v0 = vpop.eup %3799 }
0x1d89   :  { %v2539_v2 = vmul.f32 %v3800_v0, %v2523_v32 }
0x1d8b   :  { %v2545_v5 = vmul.f32 %v2544_v3, %v2539_v2 }
0x1d8c   :  { %v3802_v17 = vpop.eup %3801 }
0x1d8d   :  { %v2540_v19 = vmul.f32 %v3802_v17, %v2524_v29  ;;  %v2551_v6 = vadd.f32 %v2550_v4, %v2545_v5 }
0x1d8f   :  { %v2546_v7 = vmul.f32 %v2544_v3, %v2540_v19  ;;  %3327 = vmatprep.mubr.msk.f32.mxu0 %vm154_vm1, %v2551_v6  ;;  %v2761_v6 = vld [vmem:[%s4645_s4] sm:$0x3] }
0x1d91   :  { %v2552_v18 = vadd.f32 %v2550_v4, %v2546_v7 }
0x1d93   :  { %3328 = vmatmul.mubr.msk.f32.vlgmr.msra.gmra.mrb[26].mxu0 %vm154_vm1, %v2552_v18 }
0x1d94   :  { %3369 = vmatprep.mubr.msk.f32.mxu0 %vm3851_vm12, %v3852_v62 }
0x1e66   :  { %v3329_v49 = vpop.f32.mrb[26].mxu0 }
0x1e67   :  { %v2640_v35 = vadd.f32 %v3329_v49, %v2561_v16  ;;  %v2634_v29 = vpop.f32.mrb[27].mxu0 }
0x1e68   :  { %v2635_v32 = vadd.f32 %v2634_v29, %v2561_v16 }
0x1e69   :  { %v2646_v25 = vmul.f32 0.044715, %v2640_v35  ;;  %v2644_v60 = vmul.f32 0.5, %v2640_v35 }
0x1e6a   :  { %v2645_v50 = vmul.f32 0.044715, %v2635_v32  ;;  %v2643_v54 = vmul.f32 0.5, %v2635_v32 }
0x1e6b   :  { %v2648_v51 = vmul.f32 %v2646_v25, %v2640_v35 }
0x1e6c   :  { %v2647_v22 = vmul.f32 %v2645_v50, %v2635_v32 }
0x1e6d   :  { %v2650_v52 = vmul.f32 %v2648_v51, %v2640_v35 }
0x1e6e   :  { %v2649_v37 = vmul.f32 %v2647_v22, %v2635_v32 }
0x1e6f   :  { %v2652_v39 = vadd.f32 %v2650_v52, %v2640_v35 }
0x1e70   :  { %v2651_v48 = vadd.f32 %v2649_v37, %v2635_v32 }
0x1e71   :  { %v2654_v43 = vmul.f32 0.7978846, %v2652_v39 }
0x1e72   :  { %v2653_v30 = vmul.f32 0.7978846, %v2651_v48 }
0x1e73   :  { %3803 = vtanh.f32 %v2654_v43 }
0x1e74   :  { %3805 = vtanh.f32 %v2653_v30 }
0x1e7d   :  { %v3804_v53 = vpop.eup %3803 }
0x1e7e   :  { %v3806_v55 = vpop.eup %3805  ;;  %v2658_v56 = vadd.f32 1.0, %v3804_v53 }
0x1e7f   :  { %v2657_v57 = vadd.f32 1.0, %v3806_v55 }
0x1e80   :  { %v2660_v58 = vmul.f32 %v2658_v56, %v2644_v60 }
0x1e81   :  { %v2659_v31 = vmul.f32 %v2657_v57, %v2643_v54 }
0x1e83   :  { %3362 = vmatprep.mubr.f32.mxu1 %v2659_v31 }
0x1e84   :  { %3363 = vmatmul.mubr.f32.vlgmr.msra.gmra.mrb[22].mxu1 %v2660_v58 }
0x1f57   :  { %v3364_v3 = vpop.f32.mrb[22].mxu1 }
0x1f58   :  { %v2754_v0 = vadd.f32 %v3364_v3, %v4526_v40  ;;  %v2744_v2 = vpop.f32.mrb[23].mxu1 }
0x1f59   :  { %v2753_v4 = vadd.f32 %v2744_v2, %v4528_v41 }
0x1f5a   :  { %v2760_v5 = vadd.f32 %v2758_v63, %v2754_v0 }
0x1f5b   :  { %v2759_v17 = vadd.f32 %v2758_v63, %v2753_v4 }
0x1f5d   :  { %v3617_v19 = vpack.c.bf16 %v2760_v5, %v2759_v17 }
0x1f5f   :  { %3619 = vmatpush3.bf16.msk.msra.mxu0 %vm4113_vm9, %v3617_v19 }
0x1f62   :  { %3370 = vmatmul.mubr.msk.f32.vlgmr.msra.gmra.mrb[28].mxu0 %vm374_vm5, %v2761_v6 }
0x2035   :  { %v2834_v10 = vpop.f32.mrb[28].mxu0 }
0x2036   :  { %v3371_v21 = vpop.f32.mrb[29].mxu0  ;;  %v2839_v61 = vsel %vm158_vm2, %v2834_v10, 0.0 }
0x2037   :  { %2840 = vadd.xlane.f32.xlu0 %v2839_v61 }
0x20c4   :  { %v2841_v40 = vpop.xlane.xlu0 %2840 }
0x20c5   :  { %v2842_v7 = vmul.f32 0.03125, %v2841_v40 }
0x20c7   :  { %v2843_v41 = vsub.f32 %v2834_v10, %v2842_v7 }
0x20c9   :  { %v2844_v18 = vmul.f32 %v2843_v41, %v2843_v41 }
0x20cb   :  { %v2845_v59 = vsel %vm158_vm2, %v2844_v18, 0.0 }
0x20cc   :  { %2846 = vadd.xlane.f32.xlu1 %v2845_v59 }
0x2159   :  { %v2847_v1 = vpop.xlane.xlu1 %2846 }
0x215a   :  { %v2848_v28 = vmul.f32 0.03125, %v2847_v1 }
0x215c   :  { %v2849_v20 = vadd.f32 1e-06, %v2848_v28 }
0x215e   :  { %3807 = vrsqrt.f32 %v2849_v20 }
0x2168   :  { %v3808_v24 = vpop.eup %3807 }
0x2169   :  { %v2851_v26 = vmul.f32 %v3808_v24, %v2843_v41 }
0x216b   :  { %v2856_v33 = vmul.f32 %v2855_v23, %v2851_v26 }
0x216d   :  { %v2861_v34 = vadd.f32 %v2860_v27, %v2856_v33 }
0x216f   :  { %2862 = vst.msk [vmem:[#allocation2] sm:$0x3] %vm158_vm2, %v2861_v34 }
0x2170   :  { %3822 = shalt.err (!%p3819_p4)
}
0x2171   :  { %s3823_s15 = scalar_lea.hbm %s4652_s11, 32 }
0x2172   :  { %p3824_p5 = scmp.ne.s32.totalorder %s4652_s11, %s3823_s15  ;;  %p3827_p6 = scmp.lt.u32.totalorder %s3823_s15, %s4652_s11 }
0x2174   :  { %p3829_p7 = pnand %p3827_p6, %p3824_p5 }
0x2176   :  { %3832 = shalt.err (!%p3829_p7)
}
0x2177   :  { %2872 = dma.vmem_to_hbm [thread:$0]  %s2870_s28, 32, %s4652_s11, [#allocation3]  }
0x2178   :  { %3833 = dma.done.wait [#allocation3], 32  }
0x2179   :  { %3834 = vsyncadd [#allocation3], 4294967264 }
0x217a   :  { %2876 = vsyncpa [#allocation3], 1 }

</bundles_post_ra>
